<compile_context>
chip_gen: v6e
topology: v6e:2x2x1
jax: 0.10.0
libtpu: 0.0.40
codegen_flags: <defaults>
</compile_context>

<pallas_src>
import functools
import itertools

import jax
import jax.numpy as jnp
from jax import lax
from jax.experimental import pallas as pl
from jax.experimental.pallas import tpu as pltpu


# ----------------------------------------------------------------------------
# Fused kernel: one H-strip per grid step.
#   3x3 conv (9 accumulating taps, channel-major output) + BN0 + ReLU6 -> feat
#   global-avg-pool partial sum -> scratch; 1x1 conv + BN1 at last strip -> att
# ----------------------------------------------------------------------------
def _channel_att_kernel(x_ref, top_ref, bot_ref, w3_ref, b0_ref, w1_ref, b1_ref,
                        feat_ref, att_ref, pool_ref, *, total_hw):
    # x_ref   : (1, tile_h, W, Cin)  bf16   current row strip (NHWC)
    # top_ref : (1, 1, W, Cin)       bf16   row above the strip (clamped)
    # bot_ref : (1, 1, W, Cin)       bf16   row below the strip (clamped)
    # w3_ref  : (9, Cin, Cout)       bf16   3x3 weights, BN0 scale folded in
    # b0_ref  : (Cout, 1)            f32    BN0 shift
    # w1_ref  : (Cout, Cout)         f32    1x1 weights, BN1 scale folded in
    # b1_ref  : (1, Cout)            f32    BN1 shift
    # feat_ref: (1, Cout, tile_h*W)  f32    channel-major feat strip
    # att_ref : (1, 1, Cout)         f32    channel attention vector
    # pool_ref: (Cout, 1)            f32    running global-avg-pool sum
    tile_h = x_ref.shape[1]
    w = x_ref.shape[2]
    cin = x_ref.shape[3]
    cout = w3_ref.shape[2]
    p = tile_h * w

    i = pl.program_id(1)
    n_strips = pl.num_programs(1)

    xs = x_ref[0]                                     # (tile_h, W, Cin)
    top = top_ref[0]                                  # (1, W, Cin)
    bot = bot_ref[0]                                  # (1, W, Cin)
    # Zero-pad halo rows at the image top / bottom (clamped fetch otherwise).
    top = jnp.where(i == 0, jnp.zeros_like(top), top)
    bot = jnp.where(i == n_strips - 1, jnp.zeros_like(bot), bot)

    xh = jnp.concatenate([top, xs, bot], axis=0)      # (tile_h+2, W, Cin)
    zc = jnp.zeros((tile_h + 2, 1, cin), xh.dtype)    # zero W halo columns
    xp = jnp.concatenate([zc, xh, zc], axis=1)        # (tile_h+2, W+2, Cin)

    # 9 accumulating per-tap matmuls, each producing a channel-major (Cout, P)
    # contribution (no im2col slab, no output transpose).  bf16 x bf16 -> f32.
    acc = jnp.zeros((cout, p), jnp.float32)
    for t, (dy, dx) in enumerate(itertools.product(range(3), range(3))):
        tap = xp[dy:dy + tile_h, dx:dx + w, :].reshape(p, cin)   # (P, Cin)
        acc = acc + lax.dot_general(
            w3_ref[t], tap,                                       # (Cin, Cout) x (P, Cin)
            dimension_numbers=(((0,), (1,)), ((), ())),
            preferred_element_type=jnp.float32)                   # -> (Cout, P)

    # BN0 folded to shift-only, then ReLU6; lane-dense channel-major store.
    feat = jnp.clip(acc + b0_ref[...], 0.0, 6.0)      # (Cout, P) f32
    feat_ref[0] = feat

    # Global average pool accumulated across strips in VMEM scratch.
    @pl.when(i == 0)
    def _():
        pool_ref[...] = jnp.zeros_like(pool_ref)

    pool_ref[...] += jnp.sum(feat, axis=1, keepdims=True)   # (Cout, 1)

    @pl.when(i == n_strips - 1)
    def _():
        pooled = pool_ref[...] * (1.0 / total_hw)            # (Cout, 1)
        att = lax.dot_general(                                # (1, Cout)
            pooled, w1_ref[...],
            dimension_numbers=(((0,), (0,)), ((), ())),
            preferred_element_type=jnp.float32)
        att_ref[0] = att + b1_ref[...]


# ----------------------------------------------------------------------------
# Wrapper: BN folding, strip-size selection, pallas_call plumbing.
# ----------------------------------------------------------------------------
def _bn_fold(gamma, beta, mean, var, eps):
    scale = gamma * lax.rsqrt(var + eps)
    shift = beta - mean * scale
    return scale, shift


def _choose_tile_h(h, w, cin, cout, budget_bytes=16 * 1024 * 1024):
    """Largest H strip that (a) divides H, (b) keeps the feat store lane-dense
    (tile_h*W % 128 == 0, or a single full strip), (c) fits a conservative VMEM
    budget, and (d) leaves >= 2 strips per image so the pipeline can overlap the
    next strip's DMA with compute.  Halve budget_bytes for v7x, grow for v6e."""
    def est(th):
        strip_in = 2 * (th + 2) * w * cin * 2              # double-buffered bf16
        strip_out = 2 * th * w * cout * 4                   # double-buffered f32
        work = 3 * (th + 2) * (w + 2) * cin * 2 + th * w * cout * 4
        return strip_in + strip_out + work

    cands = [th for th in range(1, h + 1)
             if h % th == 0 and ((th * w) % 128 == 0 or th == h)
             and est(th) <= budget_bytes]
    if not cands:
        return h
    multi = [th for th in cands if h // th >= 2]
    return max(multi) if multi else max(cands)


@jax.jit
def channel_att_forward(x_nchw, params, eps=1e-5):
    # NCHW -> NHWC relayout (one HBM pass; see TODO above about accepting NHWC).
    x = jnp.transpose(x_nchw, (0, 2, 3, 1)).astype(jnp.bfloat16)
    n, h, w, cin = x.shape

    w3 = params["w3"].astype(jnp.float32)             # (3, 3, Cin, Cout) HWIO
    cout = w3.shape[-1]
    w1 = params["w1"].astype(jnp.float32)             # (Cout_in, Cout_out)

    scale0, shift0 = _bn_fold(params["bn0_gamma"], params["bn0_beta"],
                              params["bn0_mean"], params["bn0_var"], eps)
    scale1, shift1 = _bn_fold(params["bn1_gamma"], params["bn1_beta"],
                              params["bn1_mean"], params["bn1_var"], eps)

    # Fold BN scales into conv weights; MXU operands in bf16, shifts in f32.
    w3f = (w3 * scale0).reshape(9, cin, cout).astype(jnp.bfloat16)
    b0 = shift0.reshape(cout, 1).astype(jnp.float32)
    w1f = (w1 * scale1).astype(jnp.float32)           # tiny matmul -> keep f32
    b1 = shift1.reshape(1, cout).astype(jnp.float32)

    tile_h = _choose_tile_h(h, w, cin, cout)
    n_strips = h // tile_h

    kernel = functools.partial(_channel_att_kernel, total_hw=float(h * w))

    feat_flat, att_flat = pl.pallas_call(
        kernel,
        out_shape=(
            jax.ShapeDtypeStruct((n, cout, h * w), jnp.float32),
            jax.ShapeDtypeStruct((n, 1, cout), jnp.float32),
        ),
        grid=(n, n_strips),
        in_specs=[
            # Current strip of tile_h rows.
            pl.BlockSpec((1, tile_h, w, cin), lambda b, i: (b, i, 0, 0)),
            # Halo row above (clamped to row 0; zeroed in-kernel at i == 0).
            pl.BlockSpec((1, 1, w, cin),
                         lambda b, i: (b, jnp.maximum(i * tile_h - 1, 0), 0, 0)),
            # Halo row below (clamped to row H-1; zeroed in-kernel at last strip).
            pl.BlockSpec((1, 1, w, cin),
                         lambda b, i: (b, jnp.minimum((i + 1) * tile_h, h - 1), 0, 0)),
            pl.BlockSpec((9, cin, cout), lambda b, i: (0, 0, 0)),
            pl.BlockSpec((cout, 1), lambda b, i: (0, 0)),
            pl.BlockSpec((cout, cout), lambda b, i: (0, 0)),
            pl.BlockSpec((1, cout), lambda b, i: (0, 0)),
        ],
        out_specs=(
            pl.BlockSpec((1, cout, tile_h * w), lambda b, i: (b, 0, i)),
            pl.BlockSpec((1, 1, cout), lambda b, i: (b, 0, 0)),
        ),
        scratch_shapes=[pltpu.VMEM((cout, 1), jnp.float32)],
        compiler_params=pltpu.CompilerParams(
            dimension_semantics=("parallel", "arbitrary"),
            vmem_limit_bytes=64 * 1024 * 1024),
    )(x, x, x, w3f, b0, w1f, b1)

    feat = feat_flat.reshape(n, cout, h, w)            # free metadata reshape
    atten = att_flat.reshape(n, cout, 1, 1)
    return feat, atten


# ----------------------------------------------------------------------------
# Pure-JAX reference (bf16 operands, f32 accumulate — matches the kernel path).
# ----------------------------------------------------------------------------
def _reference(x_nchw, params, eps=1e-5):
    scale0, shift0 = _bn_fold(params["bn0_gamma"], params["bn0_beta"],
                              params["bn0_mean"], params["bn0_var"], eps)
    scale1, shift1 = _bn_fold(params["bn1_gamma"], params["bn1_beta"],
                              params["bn1_mean"], params["bn1_var"], eps)
    w3f = (params["w3"].astype(jnp.float32) * scale0)
    w3f = w3f.astype(jnp.bfloat16).astype(jnp.float32)           # match kernel
    xb = x_nchw.astype(jnp.bfloat16).astype(jnp.float32)
    w3_oihw = jnp.transpose(w3f, (3, 2, 0, 1))
    y = lax.conv_general_dilated(
        xb, w3_oihw, window_strides=(1, 1), padding=((1, 1), (1, 1)),
        dimension_numbers=("NCHW", "OIHW", "NCHW"),
        precision=lax.Precision.HIGHEST)
    feat = jnp.clip(y + shift0[None, :, None, None], 0.0, 6.0)
    pooled = jnp.mean(feat, axis=(2, 3), keepdims=True)
    w1f = params["w1"].astype(jnp.float32) * scale1[None, :]
    att = jnp.einsum("ncij,cd->ndij", pooled, w1f,
                     precision=lax.Precision.HIGHEST)
    att = att + shift1[None, :, None, None]
    return feat, att


def init_params(key, in_channels, out_channels):
    ks = jax.random.split(key, 10)
    return {
        # 3x3 conv weight, HWIO layout (PyTorch OIHW (Cout,Cin,3,3) transposed).
        "w3": 0.1 * jax.random.normal(
            ks[0], (3, 3, in_channels, out_channels), jnp.float32),
        "bn0_gamma": 0.5 + jax.random.uniform(ks[1], (out_channels,), jnp.float32),
        "bn0_beta": 0.1 * jax.random.normal(ks[2], (out_channels,), jnp.float32),
        "bn0_mean": 0.1 * jax.random.normal(ks[3], (out_channels,), jnp.float32),
        "bn0_var": 0.5 + jax.random.uniform(ks[4], (out_channels,), jnp.float32),
        # 1x1 conv weight, (in, out) layout (PyTorch (Cout,Cout,1,1) transposed).
        "w1": 0.1 * jax.random.normal(
            ks[5], (out_channels, out_channels), jnp.float32),
        "bn1_gamma": 0.5 + jax.random.uniform(ks[6], (out_channels,), jnp.float32),
        "bn1_beta": 0.1 * jax.random.normal(ks[7], (out_channels,), jnp.float32),
        "bn1_mean": 0.1 * jax.random.normal(ks[8], (out_channels,), jnp.float32),
        "bn1_var": 0.5 + jax.random.uniform(ks[9], (out_channels,), jnp.float32),
    }


if __name__ == "__main__":
    key = jax.random.PRNGKey(0)
    kx, kp = jax.random.split(key)

    N, Cin, H, W = 2, 8, 16, 16
    Cout = 16

    x = jax.random.normal(kx, (N, Cin, H, W), jnp.float32)
    params = init_params(kp, Cin, Cout)

    feat, atten = channel_att_forward(x, params)
    jax.block_until_ready((feat, atten))
    assert feat.shape == (N, Cout, H, W)
    assert atten.shape == (N, Cout, 1, 1)

    feat_ref, att_ref = _reference(x, params)
    assert jnp.allclose(feat, feat_ref, rtol=1e-4, atol=1e-4), (
        "feat max |err| = %e" % float(jnp.max(jnp.abs(feat - feat_ref))))
    assert jnp.allclose(atten, att_ref, rtol=1e-4, atol=1e-4), (
        "atten max |err| = %e" % float(jnp.max(jnp.abs(atten - att_ref))))

    print("KERNEL_OK")
</pallas_src>

<mosaic_0001>
module attributes {stable_mosaic.version = 11 : i64} {
  func.func @_channel_att_kernel(%arg0: i32, %arg1: i32, %arg2: memref<1x8x16x8xbf16, #tpu.memory_space<vmem>>, %arg3: memref<1x1x16x8xbf16, #tpu.memory_space<vmem>>, %arg4: memref<1x1x16x8xbf16, #tpu.memory_space<vmem>>, %arg5: memref<9x8x16xbf16, #tpu.memory_space<vmem>>, %arg6: memref<16x1xf32, #tpu.memory_space<vmem>>, %arg7: memref<16x16xf32, #tpu.memory_space<vmem>>, %arg8: memref<1x16xf32, #tpu.memory_space<vmem>>, %arg9: memref<1x16x128xf32, #tpu.memory_space<vmem>>, %arg10: memref<1x1x16xf32, #tpu.memory_space<vmem>>, %arg11: memref<16x1xf32, #tpu.memory_space<vmem>>) attributes {dimension_semantics = [#tpu.dimension_semantics<parallel>, #tpu.dimension_semantics<arbitrary>], iteration_bounds = array<i64: 2, 2>, scalar_prefetch = 0 : i64, scratch_operands = 1 : i64, tpu.core_type = #tpu.core_type<tc>, window_params = [{transform_indices = @transform_0, window_bounds = array<i64: 1, 8, 16, 8>}, {transform_indices = @transform_1, window_bounds = array<i64: 1, 1, 16, 8>}, {transform_indices = @transform_2, window_bounds = array<i64: 1, 1, 16, 8>}, {pipeline_mode = #tpu.pipeline_mode<synchronous>, transform_indices = @transform_3, window_bounds = array<i64: 9, 8, 16>}, {pipeline_mode = #tpu.pipeline_mode<synchronous>, transform_indices = @transform_4, window_bounds = array<i64: 16, 1>}, {pipeline_mode = #tpu.pipeline_mode<synchronous>, transform_indices = @transform_5, window_bounds = array<i64: 16, 16>}, {pipeline_mode = #tpu.pipeline_mode<synchronous>, transform_indices = @transform_6, window_bounds = array<i64: 1, 16>}, {transform_indices = @transform_7, window_bounds = array<i64: 1, 16, 128>}, {transform_indices = @transform_8, window_bounds = array<i64: 1, 1, 16>}]} {
    %c0 = arith.constant 0 : index
    %c0_0 = arith.constant 0 : index
    %c0_1 = arith.constant 0 : index
    %c0_2 = arith.constant 0 : index
    %0 = vector.load %arg2[%c0, %c0_0, %c0_1, %c0_2] : memref<1x8x16x8xbf16, #tpu.memory_space<vmem>>, vector<1x8x16x8xbf16>
    %1 = vector.shape_cast %0 : vector<1x8x16x8xbf16> to vector<8x16x8xbf16>
    %c0_3 = arith.constant 0 : index
    %c0_4 = arith.constant 0 : index
    %c0_5 = arith.constant 0 : index
    %c0_6 = arith.constant 0 : index
    %2 = vector.load %arg3[%c0_3, %c0_4, %c0_5, %c0_6] : memref<1x1x16x8xbf16, #tpu.memory_space<vmem>>, vector<1x1x16x8xbf16>
    %3 = vector.shape_cast %2 : vector<1x1x16x8xbf16> to vector<1x16x8xbf16>
    %c0_7 = arith.constant 0 : index
    %c0_8 = arith.constant 0 : index
    %c0_9 = arith.constant 0 : index
    %c0_10 = arith.constant 0 : index
    %4 = vector.load %arg4[%c0_7, %c0_8, %c0_9, %c0_10] : memref<1x1x16x8xbf16, #tpu.memory_space<vmem>>, vector<1x1x16x8xbf16>
    %5 = vector.shape_cast %4 : vector<1x1x16x8xbf16> to vector<1x16x8xbf16>
    %c0_i32 = arith.constant 0 : i32
    %6 = arith.cmpi eq, %arg1, %c0_i32 : i32
    %cst = arith.constant 0.000000e+00 : bf16
    %7 = vector.broadcast %cst : bf16 to vector<1x16x8xbf16>
    %8 = arith.select %6, %7, %3 : vector<1x16x8xbf16>
    %c1_i32 = arith.constant 1 : i32
    %9 = arith.cmpi eq, %arg1, %c1_i32 : i32
    %cst_11 = arith.constant 0.000000e+00 : bf16
    %10 = vector.broadcast %cst_11 : bf16 to vector<1x16x8xbf16>
    %11 = arith.select %9, %10, %5 : vector<1x16x8xbf16>
    %12 = tpu.concatenate %8, %1, %11 in 0 : vector<1x16x8xbf16>, vector<8x16x8xbf16>, vector<1x16x8xbf16> -> vector<10x16x8xbf16>
    %cst_12 = arith.constant 0.000000e+00 : bf16
    %13 = vector.broadcast %cst_12 : bf16 to vector<10x1x8xbf16>
    %14 = tpu.concatenate %13, %12, %13 in 1 : vector<10x1x8xbf16>, vector<10x16x8xbf16>, vector<10x1x8xbf16> -> vector<10x18x8xbf16>
    %cst_13 = arith.constant 0.000000e+00 : f32
    %15 = vector.broadcast %cst_13 : f32 to vector<16x128xf32>
    %16 = vector.extract_strided_slice %14 {offsets = [0, 0, 0], sizes = [8, 16, 8], strides = [1, 1, 1]} : vector<10x18x8xbf16> to vector<8x16x8xbf16>
    %17 = vector.shape_cast %16 : vector<8x16x8xbf16> to vector<128x8xbf16>
    %c0_14 = arith.constant 0 : index
    %c0_15 = arith.constant 0 : index
    %c0_16 = arith.constant 0 : index
    %18 = vector.load %arg5[%c0_14, %c0_15, %c0_16] : memref<9x8x16xbf16, #tpu.memory_space<vmem>>, vector<1x8x16xbf16>
    %19 = vector.shape_cast %18 : vector<1x8x16xbf16> to vector<8x16xbf16>
    %cst_17 = arith.constant dense<0.000000e+00> : vector<16x128xf32>
    %20 = tpu.matmul %19, %17, %cst_17 {dimension_numbers = #tpu.dot_dimension_numbers<[0], [1], [1], [0], [0, 1, 1, 0], [], []>} : vector<8x16xbf16>, vector<128x8xbf16>, vector<16x128xf32> -> vector<16x128xf32>
    %21 = arith.addf %15, %20 : vector<16x128xf32>
    %22 = vector.extract_strided_slice %14 {offsets = [0, 1, 0], sizes = [8, 16, 8], strides = [1, 1, 1]} : vector<10x18x8xbf16> to vector<8x16x8xbf16>
    %23 = vector.shape_cast %22 : vector<8x16x8xbf16> to vector<128x8xbf16>
    %c1 = arith.constant 1 : index
    %c0_18 = arith.constant 0 : index
    %c0_19 = arith.constant 0 : index
    %24 = vector.load %arg5[%c1, %c0_18, %c0_19] : memref<9x8x16xbf16, #tpu.memory_space<vmem>>, vector<1x8x16xbf16>
    %25 = vector.shape_cast %24 : vector<1x8x16xbf16> to vector<8x16xbf16>
    %cst_20 = arith.constant dense<0.000000e+00> : vector<16x128xf32>
    %26 = tpu.matmul %25, %23, %cst_20 {dimension_numbers = #tpu.dot_dimension_numbers<[0], [1], [1], [0], [0, 1, 1, 0], [], []>} : vector<8x16xbf16>, vector<128x8xbf16>, vector<16x128xf32> -> vector<16x128xf32>
    %27 = arith.addf %21, %26 : vector<16x128xf32>
    %28 = vector.extract_strided_slice %14 {offsets = [0, 2, 0], sizes = [8, 16, 8], strides = [1, 1, 1]} : vector<10x18x8xbf16> to vector<8x16x8xbf16>
    %29 = vector.shape_cast %28 : vector<8x16x8xbf16> to vector<128x8xbf16>
    %c2 = arith.constant 2 : index
    %c0_21 = arith.constant 0 : index
    %c0_22 = arith.constant 0 : index
    %30 = vector.load %arg5[%c2, %c0_21, %c0_22] : memref<9x8x16xbf16, #tpu.memory_space<vmem>>, vector<1x8x16xbf16>
    %31 = vector.shape_cast %30 : vector<1x8x16xbf16> to vector<8x16xbf16>
    %cst_23 = arith.constant dense<0.000000e+00> : vector<16x128xf32>
    %32 = tpu.matmul %31, %29, %cst_23 {dimension_numbers = #tpu.dot_dimension_numbers<[0], [1], [1], [0], [0, 1, 1, 0], [], []>} : vector<8x16xbf16>, vector<128x8xbf16>, vector<16x128xf32> -> vector<16x128xf32>
    %33 = arith.addf %27, %32 : vector<16x128xf32>
    %34 = vector.extract_strided_slice %14 {offsets = [1, 0, 0], sizes = [8, 16, 8], strides = [1, 1, 1]} : vector<10x18x8xbf16> to vector<8x16x8xbf16>
    %35 = vector.shape_cast %34 : vector<8x16x8xbf16> to vector<128x8xbf16>
    %c3 = arith.constant 3 : index
    %c0_24 = arith.constant 0 : index
    %c0_25 = arith.constant 0 : index
    %36 = vector.load %arg5[%c3, %c0_24, %c0_25] : memref<9x8x16xbf16, #tpu.memory_space<vmem>>, vector<1x8x16xbf16>
    %37 = vector.shape_cast %36 : vector<1x8x16xbf16> to vector<8x16xbf16>
    %cst_26 = arith.constant dense<0.000000e+00> : vector<16x128xf32>
    %38 = tpu.matmul %37, %35, %cst_26 {dimension_numbers = #tpu.dot_dimension_numbers<[0], [1], [1], [0], [0, 1, 1, 0], [], []>} : vector<8x16xbf16>, vector<128x8xbf16>, vector<16x128xf32> -> vector<16x128xf32>
    %39 = arith.addf %33, %38 : vector<16x128xf32>
    %40 = vector.extract_strided_slice %14 {offsets = [1, 1, 0], sizes = [8, 16, 8], strides = [1, 1, 1]} : vector<10x18x8xbf16> to vector<8x16x8xbf16>
    %41 = vector.shape_cast %40 : vector<8x16x8xbf16> to vector<128x8xbf16>
    %c4 = arith.constant 4 : index
    %c0_27 = arith.constant 0 : index
    %c0_28 = arith.constant 0 : index
    %42 = vector.load %arg5[%c4, %c0_27, %c0_28] : memref<9x8x16xbf16, #tpu.memory_space<vmem>>, vector<1x8x16xbf16>
    %43 = vector.shape_cast %42 : vector<1x8x16xbf16> to vector<8x16xbf16>
    %cst_29 = arith.constant dense<0.000000e+00> : vector<16x128xf32>
    %44 = tpu.matmul %43, %41, %cst_29 {dimension_numbers = #tpu.dot_dimension_numbers<[0], [1], [1], [0], [0, 1, 1, 0], [], []>} : vector<8x16xbf16>, vector<128x8xbf16>, vector<16x128xf32> -> vector<16x128xf32>
    %45 = arith.addf %39, %44 : vector<16x128xf32>
    %46 = vector.extract_strided_slice %14 {offsets = [1, 2, 0], sizes = [8, 16, 8], strides = [1, 1, 1]} : vector<10x18x8xbf16> to vector<8x16x8xbf16>
    %47 = vector.shape_cast %46 : vector<8x16x8xbf16> to vector<128x8xbf16>
    %c5 = arith.constant 5 : index
    %c0_30 = arith.constant 0 : index
    %c0_31 = arith.constant 0 : index
    %48 = vector.load %arg5[%c5, %c0_30, %c0_31] : memref<9x8x16xbf16, #tpu.memory_space<vmem>>, vector<1x8x16xbf16>
    %49 = vector.shape_cast %48 : vector<1x8x16xbf16> to vector<8x16xbf16>
    %cst_32 = arith.constant dense<0.000000e+00> : vector<16x128xf32>
    %50 = tpu.matmul %49, %47, %cst_32 {dimension_numbers = #tpu.dot_dimension_numbers<[0], [1], [1], [0], [0, 1, 1, 0], [], []>} : vector<8x16xbf16>, vector<128x8xbf16>, vector<16x128xf32> -> vector<16x128xf32>
    %51 = arith.addf %45, %50 : vector<16x128xf32>
    %52 = vector.extract_strided_slice %14 {offsets = [2, 0, 0], sizes = [8, 16, 8], strides = [1, 1, 1]} : vector<10x18x8xbf16> to vector<8x16x8xbf16>
    %53 = vector.shape_cast %52 : vector<8x16x8xbf16> to vector<128x8xbf16>
    %c6 = arith.constant 6 : index
    %c0_33 = arith.constant 0 : index
    %c0_34 = arith.constant 0 : index
    %54 = vector.load %arg5[%c6, %c0_33, %c0_34] : memref<9x8x16xbf16, #tpu.memory_space<vmem>>, vector<1x8x16xbf16>
    %55 = vector.shape_cast %54 : vector<1x8x16xbf16> to vector<8x16xbf16>
    %cst_35 = arith.constant dense<0.000000e+00> : vector<16x128xf32>
    %56 = tpu.matmul %55, %53, %cst_35 {dimension_numbers = #tpu.dot_dimension_numbers<[0], [1], [1], [0], [0, 1, 1, 0], [], []>} : vector<8x16xbf16>, vector<128x8xbf16>, vector<16x128xf32> -> vector<16x128xf32>
    %57 = arith.addf %51, %56 : vector<16x128xf32>
    %58 = vector.extract_strided_slice %14 {offsets = [2, 1, 0], sizes = [8, 16, 8], strides = [1, 1, 1]} : vector<10x18x8xbf16> to vector<8x16x8xbf16>
    %59 = vector.shape_cast %58 : vector<8x16x8xbf16> to vector<128x8xbf16>
    %c7 = arith.constant 7 : index
    %c0_36 = arith.constant 0 : index
    %c0_37 = arith.constant 0 : index
    %60 = vector.load %arg5[%c7, %c0_36, %c0_37] : memref<9x8x16xbf16, #tpu.memory_space<vmem>>, vector<1x8x16xbf16>
    %61 = vector.shape_cast %60 : vector<1x8x16xbf16> to vector<8x16xbf16>
    %cst_38 = arith.constant dense<0.000000e+00> : vector<16x128xf32>
    %62 = tpu.matmul %61, %59, %cst_38 {dimension_numbers = #tpu.dot_dimension_numbers<[0], [1], [1], [0], [0, 1, 1, 0], [], []>} : vector<8x16xbf16>, vector<128x8xbf16>, vector<16x128xf32> -> vector<16x128xf32>
    %63 = arith.addf %57, %62 : vector<16x128xf32>
    %64 = vector.extract_strided_slice %14 {offsets = [2, 2, 0], sizes = [8, 16, 8], strides = [1, 1, 1]} : vector<10x18x8xbf16> to vector<8x16x8xbf16>
    %65 = vector.shape_cast %64 : vector<8x16x8xbf16> to vector<128x8xbf16>
    %c8 = arith.constant 8 : index
    %c0_39 = arith.constant 0 : index
    %c0_40 = arith.constant 0 : index
    %66 = vector.load %arg5[%c8, %c0_39, %c0_40] : memref<9x8x16xbf16, #tpu.memory_space<vmem>>, vector<1x8x16xbf16>
    %67 = vector.shape_cast %66 : vector<1x8x16xbf16> to vector<8x16xbf16>
    %cst_41 = arith.constant dense<0.000000e+00> : vector<16x128xf32>
    %68 = tpu.matmul %67, %65, %cst_41 {dimension_numbers = #tpu.dot_dimension_numbers<[0], [1], [1], [0], [0, 1, 1, 0], [], []>} : vector<8x16xbf16>, vector<128x8xbf16>, vector<16x128xf32> -> vector<16x128xf32>
    %69 = arith.addf %63, %68 : vector<16x128xf32>
    %c0_42 = arith.constant 0 : index
    %c0_43 = arith.constant 0 : index
    %70 = vector.load %arg6[%c0_42, %c0_43] : memref<16x1xf32, #tpu.memory_space<vmem>>, vector<16x1xf32>
    %71 = vector.broadcast %70 : vector<16x1xf32> to vector<16x128xf32>
    %72 = arith.addf %69, %71 : vector<16x128xf32>
    %cst_44 = arith.constant 0.000000e+00 : f32
    %cst_45 = arith.constant 6.000000e+00 : f32
    %73 = vector.broadcast %cst_44 : f32 to vector<16x128xf32>
    %74 = arith.maximumf %73, %72 : vector<16x128xf32>
    %75 = vector.broadcast %cst_45 : f32 to vector<16x128xf32>
    %76 = arith.minimumf %75, %74 : vector<16x128xf32>
    %c0_46 = arith.constant 0 : index
    %c0_47 = arith.constant 0 : index
    %c0_48 = arith.constant 0 : index
    %77 = vector.load %arg9[%c0_46, %c0_47, %c0_48] : memref<1x16x128xf32, #tpu.memory_space<vmem>>, vector<1x16x128xf32>
    %78 = vector.shape_cast %77 : vector<1x16x128xf32> to vector<16x128xf32>
    %79 = vector.shape_cast %76 : vector<16x128xf32> to vector<1x16x128xf32>
    tpu.vector_store %arg9[%c0_46, %c0_47, %c0_48], %79 {strides = array<i32>} : memref<1x16x128xf32, #tpu.memory_space<vmem>>, vector<1x16x128xf32>,
    %c0_i32_49 = arith.constant 0 : i32
    %80 = arith.cmpi eq, %arg1, %c0_i32_49 : i32
    %81 = arith.extui %80 : i1 to i32
    %c0_i32_50 = arith.constant 0 : i32
    %82 = arith.cmpi ne, %81, %c0_i32_50 : i32
    scf.if %82 {
      %cst_58 = arith.constant 0.000000e+00 : f32
      %91 = vector.broadcast %cst_58 : f32 to vector<16x1xf32>
      %c0_59 = arith.constant 0 : index
      %c0_60 = arith.constant 0 : index
      %92 = vector.load %arg11[%c0_59, %c0_60] : memref<16x1xf32, #tpu.memory_space<vmem>>, vector<16x1xf32>
      tpu.vector_store %arg11[%c0_59, %c0_60], %91 {strides = array<i32>} : memref<16x1xf32, #tpu.memory_space<vmem>>, vector<16x1xf32>,
    } else {
    }
    %c0_51 = arith.constant 0 : index
    %c0_52 = arith.constant 0 : index
    %83 = vector.load %arg11[%c0_51, %c0_52] : memref<16x1xf32, #tpu.memory_space<vmem>>, vector<16x1xf32>
    %cst_53 = arith.constant dense<0.000000e+00> : vector<16xf32>
    %84 = vector.multi_reduction <add>, %76, %cst_53 [1] : vector<16x128xf32> to vector<16xf32>
    %85 = vector.shape_cast %84 : vector<16xf32> to vector<16x1xf32>
    %86 = arith.addf %83, %85 : vector<16x1xf32>
    %c0_54 = arith.constant 0 : index
    %c0_55 = arith.constant 0 : index
    %87 = vector.load %arg11[%c0_54, %c0_55] : memref<16x1xf32, #tpu.memory_space<vmem>>, vector<16x1xf32>
    tpu.vector_store %arg11[%c0_54, %c0_55], %86 {strides = array<i32>} : memref<16x1xf32, #tpu.memory_space<vmem>>, vector<16x1xf32>,
    %c1_i32_56 = arith.constant 1 : i32
    %88 = arith.cmpi eq, %arg1, %c1_i32_56 : i32
    %89 = arith.extui %88 : i1 to i32
    %c0_i32_57 = arith.constant 0 : i32
    %90 = arith.cmpi ne, %89, %c0_i32_57 : i32
    scf.if %90 {
      %c0_58 = arith.constant 0 : index
      %c0_59 = arith.constant 0 : index
      %91 = vector.load %arg11[%c0_58, %c0_59] : memref<16x1xf32, #tpu.memory_space<vmem>>, vector<16x1xf32>
      %cst_60 = arith.constant 3.906250e-03 : f32
      %92 = vector.broadcast %cst_60 : f32 to vector<16x1xf32>
      %93 = arith.mulf %91, %92 : vector<16x1xf32>
      %c0_61 = arith.constant 0 : index
      %c0_62 = arith.constant 0 : index
      %94 = vector.load %arg7[%c0_61, %c0_62] : memref<16x16xf32, #tpu.memory_space<vmem>>, vector<16x16xf32>
      %cst_63 = arith.constant dense<0.000000e+00> : vector<1x16xf32>
      %95 = tpu.matmul %93, %94, %cst_63 {dimension_numbers = #tpu.dot_dimension_numbers<[0], [0], [1], [1], [0, 1, 1, 1], [], []>} : vector<16x1xf32>, vector<16x16xf32>, vector<1x16xf32> -> vector<1x16xf32>
      %c0_64 = arith.constant 0 : index
      %c0_65 = arith.constant 0 : index
      %96 = vector.load %arg8[%c0_64, %c0_65] : memref<1x16xf32, #tpu.memory_space<vmem>>, vector<1x16xf32>
      %97 = arith.addf %95, %96 : vector<1x16xf32>
      %c0_66 = arith.constant 0 : index
      %c0_67 = arith.constant 0 : index
      %c0_68 = arith.constant 0 : index
      %98 = vector.load %arg10[%c0_66, %c0_67, %c0_68] : memref<1x1x16xf32, #tpu.memory_space<vmem>>, vector<1x1x16xf32>
      %99 = vector.shape_cast %98 : vector<1x1x16xf32> to vector<1x16xf32>
      %100 = vector.shape_cast %97 : vector<1x16xf32> to vector<1x1x16xf32>
      tpu.vector_store %arg10[%c0_66, %c0_67, %c0_68], %100 {strides = array<i32>} : memref<1x1x16xf32, #tpu.memory_space<vmem>>, vector<1x1x16xf32>,
    } else {
    }
    return
  }
  func.func @transform_0(%arg0: i32, %arg1: i32) -> (i32, i32, i32, i32) {
    %c0_i32 = arith.constant 0 : i32
    %c0_i32_0 = arith.constant 0 : i32
    %c0_i32_1 = arith.constant 0 : i32
    return %arg0, %arg1, %c0_i32, %c0_i32_0 : i32, i32, i32, i32
  }
  func.func @transform_1(%arg0: i32, %arg1: i32) -> (i32, i32, i32, i32) {
    %c8_i32 = arith.constant 8 : i32
    %0 = arith.muli %arg1, %c8_i32 : i32
    %c1_i32 = arith.constant 1 : i32
    %1 = arith.subi %0, %c1_i32 : i32
    %c0_i32 = arith.constant 0 : i32
    %2 = arith.maxsi %1, %c0_i32 : i32
    %c0_i32_0 = arith.constant 0 : i32
    %c0_i32_1 = arith.constant 0 : i32
    %c0_i32_2 = arith.constant 0 : i32
    return %arg0, %2, %c0_i32_0, %c0_i32_1 : i32, i32, i32, i32
  }
  func.func @transform_2(%arg0: i32, %arg1: i32) -> (i32, i32, i32, i32) {
    %c1_i32 = arith.constant 1 : i32
    %0 = arith.addi %arg1, %c1_i32 : i32
    %c8_i32 = arith.constant 8 : i32
    %1 = arith.muli %0, %c8_i32 : i32
    %c15_i32 = arith.constant 15 : i32
    %2 = arith.minsi %1, %c15_i32 : i32
    %c0_i32 = arith.constant 0 : i32
    %c0_i32_0 = arith.constant 0 : i32
    %c0_i32_1 = arith.constant 0 : i32
    return %arg0, %2, %c0_i32, %c0_i32_0 : i32, i32, i32, i32
  }
  func.func @transform_3(%arg0: i32, %arg1: i32) -> (i32, i32, i32) {
    %c0_i32 = arith.constant 0 : i32
    %c0_i32_0 = arith.constant 0 : i32
    %c0_i32_1 = arith.constant 0 : i32
    %c0_i32_2 = arith.constant 0 : i32
    return %c0_i32, %c0_i32_0, %c0_i32_1 : i32, i32, i32
  }
  func.func @transform_4(%arg0: i32, %arg1: i32) -> (i32, i32) {
    %c0_i32 = arith.constant 0 : i32
    %c0_i32_0 = arith.constant 0 : i32
    %c0_i32_1 = arith.constant 0 : i32
    return %c0_i32, %c0_i32_0 : i32, i32
  }
  func.func @transform_5(%arg0: i32, %arg1: i32) -> (i32, i32) {
    %c0_i32 = arith.constant 0 : i32
    %c0_i32_0 = arith.constant 0 : i32
    %c0_i32_1 = arith.constant 0 : i32
    return %c0_i32, %c0_i32_0 : i32, i32
  }
  func.func @transform_6(%arg0: i32, %arg1: i32) -> (i32, i32) {
    %c0_i32 = arith.constant 0 : i32
    %c0_i32_0 = arith.constant 0 : i32
    %c0_i32_1 = arith.constant 0 : i32
    return %c0_i32, %c0_i32_0 : i32, i32
  }
  func.func @transform_7(%arg0: i32, %arg1: i32) -> (i32, i32, i32) {
    %c0_i32 = arith.constant 0 : i32
    %c0_i32_0 = arith.constant 0 : i32
    return %arg0, %c0_i32, %arg1 : i32, i32, i32
  }
  func.func @transform_8(%arg0: i32, %arg1: i32) -> (i32, i32, i32) {
    %c0_i32 = arith.constant 0 : i32
    %c0_i32_0 = arith.constant 0 : i32
    %c0_i32_1 = arith.constant 0 : i32
    return %arg0, %c0_i32, %c0_i32_0 : i32, i32, i32
  }
}

</mosaic_0001>

<bundles_post_ra>
// kernel: channel_att_forward.1
= control target key start
LH: loop header
LB: loop body
LE: loop exit
PB: predicated region body
PF: predicated region fallthrough
CT: control target
= control target key end

     0   :  { %14 = vsyncpa [#allocation5], 0  ;;  %s3097_s0 = inlined_call_operand.vmem [shape: bf16[2,16,16,8], index: 0, kind: input, shape index: {}, may-alias: {0,1,2}]   ;;  %s3098_s1 = inlined_call_operand.vmem [shape: bf16[2,16,16,8], index: 1, kind: input, shape index: {}, may-alias: {0,1,2}]   ;;  %s3099_s2 = inlined_call_operand.vmem [shape: bf16[2,16,16,8], index: 2, kind: input, shape index: {}, may-alias: {0,1,2}]   ;;  %s3100_s3 = inlined_call_operand.vmem [shape: bf16[9,8,16], index: 3, kind: input, shape index: {}]   ;;  %s3101_s4 = inlined_call_operand.vmem [shape: f32[16,1], index: 4, kind: input, shape index: {}]   ;;  %s3102_s5 = inlined_call_operand.vmem [shape: f32[16,16], index: 5, kind: input, shape index: {}]   ;;  %s3103_s6 = inlined_call_operand.vmem [shape: f32[1,16], index: 6, kind: input, shape index: {}]   ;;  %s3104_s7 = inlined_call_operand.vmem [shape: f32[2,16,256], index: 7, kind: output, shape index: {0}]   ;;  %s3105_s8 = inlined_call_operand.hbm [shape: f32[2,1,16], index: 8, kind: output, shape index: {1}]  }
   0x1   :  { %16 = vsyncpa [#allocation5 + $0x1], 0  ;;  %s2463_s27 = smov 0   ;;  %s2465_s28 = smov 0  }
   0x2   :  { %s2467_s29 = smov 0   ;;  %s2469_s30 = smov 0  }
   0x3   :  { %s2471_s9 = smov 0   ;;  %s2473_s10 = smov 0  }
   0x4   :  { %s2475_s11 = smov 0   ;;  %s2477_s12 = smov 0  }
   0x5   :  { %s2479_s13 = smov 0   ;;  %s2481_s14 = smov 0  }
   0x6 LB: > { %3113 = sst [smem:[#allocation7_spill]] %s2373_s27  ;;  %s1850_s15 = sadd.s32 4294967295, %s2409_s14   ;;  %s2409_s14 = sphi %s2481_s14, %s22_s14   ;;  %s2405_s13 = sphi %s2479_s13, %s3139_s13   ;;  %s2401_s12 = sphi %s2477_s12, %s3138_s12   ;;  %s2397_s11 = sphi %s2475_s11, %s3137_s11   ;;  %s2393_s10 = sphi %s2473_s10, %s3136_s10   ;;  %s2389_s9 = sphi %s2471_s9, %s3135_s9   ;;  %s2385_s30 = sphi %s2469_s30, %s3134_s30   ;;  %s2381_s29 = sphi %s2467_s29, %s3133_s29   ;;  %s2377_s28 = sphi %s2465_s28, %s3141_s28   ;;  %s2373_s27 = sphi %s2463_s27, %s3140_s27  }
   0x7   : > { %3114 = sst [smem:[#allocation8_spill]] %s2381_s29  ;;  %s1851_s16 = sadd.s32 4294967294, %s2409_s14  }
   0x8   : > { %3115 = sst [smem:[#allocation9_spill]] %s2389_s9  ;;  %s31_s17 = sadd.s32 1, %s2401_s12 }
   0x9   : > { %3116 = sst [smem:[#allocation10_spill]] %s2401_s12  ;;  %s34_s18 = sadd.s32 1, %s2405_s13 }
   0xa   : > { %3117 = sst [smem:[#allocation11_spill]] %s2405_s13  ;;  %p32_p0 = scmp.ge.s32.totalorder %s31_s17, 2 }
   0xb   : > { %s227_s19 = sadd.s32 1, %s2389_s9  ;;  %p237_p1 = scmp.ne.s32.totalorder %s2389_s9, %s2385_s30 }
   0xc   : > { %p238_p2 = scmp.eq.s32.totalorder %s1850_s15, 3  ;;  %s3143_s17 = smov (%p32_p0, %s31_s17), 0 }
   0xd   : > { %3118 = sst [smem:[#allocation12_spill]] %s3143_s17  ;;  %s3145_s18 = smov (!%p32_p0, %s34_s18), %s2405_s13 }
   0xe   : > { %s223_s20 = ssub.s32 %s2401_s12, %s3143_s17  ;;  %p2525_p3 = por %p238_p2, %p237_p1 }
   0xf   : > { %p36_p4 = scmp.ge.s32.totalorder %s3145_s18, 2  ;;  %s253_s22 = sadd.s32 1, %s2381_s29 }
  0x10   : > { %p263_p5 = scmp.ne.s32.totalorder %s2381_s29, %s2377_s28  ;;  %p269_p6 = scmp.ne.s32.totalorder %s2377_s28, %s2373_s27 }
  0x11   : > { %s3147_s18 = smov (%p36_p4, %s3145_s18), 0  ;;  %p270_p8 = scmp.eq.s32.totalorder %s1851_s16, 3 }
  0x12   : > { %3120 = sst [smem:[#allocation13_spill]] %s3147_s18  ;;  %p2536_p7 = por %p263_p5, %p238_p2 }
  0x13   : > { %s222_s24 = ssub.s32 %s2405_s13, %s3147_s18  ;;  %p1860_p9 = scmp.ge.s32.totalorder %s2409_s14, 1 }
  0x14   : > { %s224_s25 = sor.u32 %s223_s20, %s222_s24  ;;  %p251_p10 = scmp.eq.s32.totalorder %s222_s24, 0 }
  0x15   : > { %p225_p11 = scmp.eq.s32.totalorder %s224_s25, 0  ;;  %p2543_p12 = por %p270_p8, %p269_p6 }
  0x16   : > { %s2548_s15 = scalar_select %p251_p10, %s2381_s29, %s253_s22  }
  0x17   : > { %s2551_s17 = scalar_select %p225_p11, %s2389_s9, %s227_s19  }
  0x18   : > { %3123 = sst [smem:[#allocation14_spill]] %s2548_s15  ;;  %p354_p13 = scmp.lt.s32.totalorder %s2409_s14, 5 }
  0x19   : > { %3124 = sst [smem:[#allocation15_spill]] %s2551_s17 }
  0x1a   : > { %p355_p0 = pnand %p1860_p9, %p354_p13 }
  0x1b   : > { %s2560_s20 = sshll.u32 (!%p355_p0), %s2393_s10, 3  ;;  %p423_p1 = scmp.lt.s32.totalorder (!%p355_p0), %s2397_s11, 1 }
  0x1c   : > { %358 = sbr.rel (%p355_p0) target bundleno = 1097 (0x449), region = 48  ;;  %p425_p2 = scmp.lt.s32.totalorder (!%p355_p0), %s2560_s20, 15 }
  0x1d   : > { %s2587_s17 = sadd.s32 (!%p355_p0), 4294967295, %s2560_s20  ;;  %p488_p6 = scmp.eq.s32.totalorder (!%p355_p0), %s2393_s10, 0 }
  0x1e   : > { %p435_p4 = scmp.gt.s32.totalorder (!%p355_p0), %s2587_s17, 0  ;;  %p1868_p5 = scmp.lt.s32.totalorder (!%p355_p0), %s2587_s17, 15 }
  0x1f   : > { %p494_p9 = scmp.eq.s32.totalorder (!%p355_p0), %s2393_s10, 1  ;;  %p1910_p10 = scmp.ne.s32.totalorder (!%p355_p0), %s2393_s10, 0 }
  0x21   : > { %v1893_v0 = vld [vmem:[%s3100_s3 + $0x4] sm:$0xf]  ;;  %v2411_v1 = vmov 0.0   ;;  %v663_v2 = vld [vmem:[%s3100_s3] sm:$0xf]  ;;  %vm2412_vm0 = vmmov 0  }
  0x22   : > { %763 = vxpose.xlu0.c.b16.start.end [1/1] (short) (narrow) %v1893_v0, 16  ;;  %2011 = vmatprep.subr.bf16.mxu0 %v2411_v1  ;;  %v1896_v3 = vld [vmem:[%s3100_s3 + $0x8] sm:$0xf]  ;;  %s424_s24 = scalar_select %p423_p1, %s2397_s11, 1  ;;  %v1898_v4 = vld [vmem:[%s3100_s3 + $0xc] sm:$0xf] }
  0x23   : > { %2031 = vmatprep.subr.bf16.mxu1 %v2411_v1  ;;  %2027 = vmatprep.mubr.msk.bf16.mxu0 %vm2412_vm0, %v2411_v1  ;;  %s426_s25 = scalar_select %p425_p2, %s2560_s20, 15  ;;  %v1900_v5 = vld [vmem:[%s3100_s3 + $0x10] sm:$0xf]  ;;  %v1902_v6 = vld [vmem:[%s3100_s3 + $0x14] sm:$0xf]  ;;  %vm640_vm1 = vcmask 1040384  }
  0x24   : > { %2047 = vmatprep.mubr.msk.bf16.mxu1 %vm2412_vm0, %v2411_v1  ;;  %967 = vxpose.xlu1.c.b16.start.end [1/1] (short) (narrow) %v1896_v3, 16  ;;  %s2580_s16 = sshll.u32 %s424_s24, 5  ;;  %vm641_vm2 = vsmask.f32 256  ;;  %vm664_vm3 = vsmask.f32 7424 }
  0x25   : > { %s1863_s12 = sshll.u32 %s426_s25, 1  ;;  %vm2602_vm4 = vmand %vm640_vm1, %vm641_vm2  ;;  %vm779_vm5 = vcmask 64512   ;;  %vm940_vm7 = vcmask 1046528  }
  0x26   : > { %848 = vxpose.xlu0.c.b16.start.end [1/1] (short) (narrow) %v663_v2, 16  ;;  %s429_s13 = sadd.s32 %s2580_s16, %s1863_s12 }
  0x27   : > { %s1865_s9 = sshll.u32 %s429_s13, 2 }
  0x28   : > { %1055 = vxpose.xlu1.c.b16.start.end [1/1] (short) (narrow) %v1898_v4, 16  ;;  %s2595_s22 = scalar_lea.vmem %s3097_s0, %s1865_s9 }
  0x29   : > { %v2293_v7 = vld [vmem:[%s2595_s22 + $0x30] sm:$0xff]   ;;  %v2294_v8 = vld [vmem:[%s2595_s22 + $0x28] sm:$0xff]   ;;  %v2295_v13 = vld [vmem:[%s2595_s22 + $0x20] sm:$0xff]   ;;  %s436_s29 = scalar_select %p435_p4, %s2587_s17, 0 }
  0x2a   : > { %1133 = vxpose.xlu0.c.b16.start.end [1/1] (short) (narrow) %v1900_v5, 16  ;;  %v600_v9 = vshrl.u32 %v2293_v7, 16  ;;  %v603_v10 = vshll.u32 %v2293_v7, 16  ;;  %v593_v11 = vshrl.u32 %v2294_v8, 16  ;;  %v596_v12 = vshll.u32 %v2294_v8, 16  ;;  %v2296_v14 = vld [vmem:[%s2595_s22 + $0x18] sm:$0xff]  }
  0x2b   : > { %v586_v18 = vshrl.u32 %v2295_v13, 16  ;;  %v589_v21 = vshll.u32 %v2295_v13, 16  ;;  %v579_v22 = vshrl.u32 %v2296_v14, 16  ;;  %v2297_v28 = vld [vmem:[%s2595_s22 + $0x10] sm:$0xff]   ;;  %v582_v32 = vshll.u32 %v2296_v14, 16  ;;  %s3149_s29 = smov (!%p1868_p5, %s436_s29), 15 }
  0x2c   : > { %1205 = vxpose.xlu1.c.b16.start.end [1/1] (short) (narrow) %v1902_v6, 16  ;;  %v602_v15 = vrot.slane %v600_v9, 7  ;;  %v595_v17 = vrot.slane %v593_v11, 7  ;;  %s1873_s9 = sshll.u32 %s3149_s29, 1  ;;  %v572_v47 = vshrl.u32 %v2297_v28, 16  ;;  %v575_v59 = vshll.u32 %v2297_v28, 16 }
  0x2d   : > { %v588_v26 = vrot.slane %v586_v18, 7  ;;  %v581_v36 = vrot.slane %v579_v22, 7  ;;  %s443_s13 = sadd.s32 %s1873_s9, %s2580_s16  ;;  %v2298_v61 = vld [vmem:[%s2595_s22 + $0x8] sm:$0xff]   ;;  %v2299_v4 = vld [vmem:[%s2595_s22] sm:$0xff]  }
  0x2e   : > { %v605_v19 = vor.u32 %v603_v10, %v602_v15  ;;  %v2609_v20 = vsel %vm2602_vm4, %v602_v15, 0  ;;  %v598_v24 = vor.u32 %v596_v12, %v595_v17  ;;  %v2617_v25 = vsel %vm2602_vm4, %v595_v17, 0  ;;  %s489_s17 = scalar_select %p488_p6, 1, 0 }
  0x2f   : > { %v757_v23 = vshll.u32 %v2609_v20, 16  ;;  %v745_v34 = vshll.u32 %v2617_v25, 16  ;;  %v591_v35 = vor.u32 %v589_v21, %v588_v26  ;;  %v584_v46 = vor.u32 %v582_v32, %v581_v36  ;;  %s1875_s18 = sshll.u32 %s443_s13, 2  ;;  %s1926_s13 = sadd.s32 8, %s2560_s20 }
  0x30   : > { %v2621_v27 = vsel %vm2602_vm4, 0, %v605_v19  ;;  %v2633_v33 = vsel %vm2602_vm4, 0, %v598_v24  ;;  %v2655_v51 = vsel %vm2602_vm4, %v588_v26, 0  ;;  %v574_v58 = vrot.slane %v572_v47, 7  ;;  %s445_s27 = scalar_lea.vmem %s3098_s1, %s1875_s18  ;;  %p452_p8 = scmp.lt.s32.totalorder %s1926_s13, 15 }
  0x31   : > { %v750_v29 = vshrl.u32 %v2621_v27, 16  ;;  %v752_v30 = vshll.u32 %v2621_v27, 16  ;;  %v2628_v31 = vsel %vm779_vm5, %v2621_v27, 0  ;;  %v759_v38 = vrot.slane %v757_v23, 1  ;;  %v484_v8 = vld [vmem:[%s445_s27] sm:$0xf] }
  0x32   : > { %2032 = vmatpush3.bf16.xpose.msra.mxu1 %v2628_v31  ;;  %v738_v39 = vshrl.u32 %v2633_v33, 16  ;;  %v740_v40 = vshll.u32 %v2633_v33, 16  ;;  %v2643_v41 = vsel %vm2602_vm4, 0, %v591_v35  ;;  %v747_v44 = vrot.slane %v745_v34, 1  ;;  %v485_v13 = vld [vmem:[%s445_s27 + $0x4] sm:$0xf] }
  0x33   : > { %v754_v37 = vrot.slane %v752_v30, 1  ;;  %2033 = vmatprep.subr.bf16.mxu1 %v2411_v1  ;;  %v728_v45 = vshll.u32 %v2643_v41, 16  ;;  %v2651_v50 = vsel %vm779_vm5, %v2633_v33, 0  ;;  %v726_v53 = vshrl.u32 %v2643_v41, 16  ;;  %s3151_s13 = smov (!%p452_p8, %s1926_s13), 15 }
  0x34   : > { %v742_v43 = vrot.slane %v740_v40, 1  ;;  %v733_v55 = vshll.u32 %v2655_v51, 16  ;;  %v2667_v56 = vsel %vm2602_vm4, 0, %v584_v46  ;;  %v2673_v60 = vsel %vm2602_vm4, %v581_v36, 0  ;;  %s3153_s13 = smov (!%p452_p8, %s3151_s13), 15 }
  0x35   : > { %v755_v42 = vor.u32 %v754_v37, %v750_v29  ;;  %v730_v54 = vrot.slane %v728_v45, 1  ;;  %v716_v62 = vshll.u32 %v2667_v56, 16  ;;  %v490_v63 = vstv %s489_s17  ;;  %s1880_s20 = sshll.u32 %s3153_s13, 1 }
  0x36   : > { %v743_v49 = vor.u32 %v742_v43, %v738_v39  ;;  %v735_v3 = vrot.slane %v733_v55, 1  ;;  %v2686_v5 = vsel %vm779_vm5, %v2643_v41, 0  ;;  %v721_v6 = vshll.u32 %v2673_v60, 16  ;;  %s460_s17 = sadd.s32 %s1880_s20, %s2580_s16 }
  0x37   : > { %v760_v48 = vsel %vm664_vm3, %v755_v42, %v759_v38  ;;  %v731_v2 = vor.u32 %v730_v54, %v726_v53  ;;  %v577_v7 = vor.u32 %v575_v59, %v574_v58  ;;  %v565_v9 = vshrl.u32 %v2298_v61, 16  ;;  %s495_s18 = scalar_select %p494_p9, 1, 0 }
  0x38   : > { %v2658_v52 = vsel %vm779_vm5, %v760_v48, 0  ;;  %v748_v57 = vsel %vm664_vm3, %v743_v49, %v747_v44  ;;  %vm2689_vm6 = vcmp.eq.s32.totalorder %v490_v63, 1  ;;  %v714_v11 = vshrl.u32 %v2667_v56, 16  ;;  %s1882_s15 = sshll.u32 %s460_s17, 2 }
  0x39   : > { %2012 = vmatpush3.bf16.xpose.msra.mxu0 %v2658_v52  ;;  %v2681_v0 = vsel %vm779_vm5, %v748_v57, 0  ;;  %v718_v12 = vrot.slane %v716_v62, 1  ;;  %v736_v14 = vsel %vm664_vm3, %v731_v2, %v735_v3  ;;  %v558_v15 = vshrl.u32 %v2299_v4, 16  ;;  %s462_s12 = scalar_lea.vmem %s3099_s2, %s1882_s15 }
  0x3a   : > { %2013 = vmatprep.subr.bf16.mxu0 %v2411_v1  ;;  %2034 = vmatpush3.bf16.xpose.msra.mxu1 %v2651_v50  ;;  %v492_v17 = vsel %vm2689_vm6, 0, %v484_v8  ;;  %v723_v18 = vrot.slane %v721_v6, 1  ;;  %v646_v19 = vsel %vm2602_vm4, 0, %v577_v7  ;;  %v656_v21 = vsel %vm2602_vm4, %v574_v58, 0 }
  0x3b   : > { %2035 = vmatprep.subr.bf16.mxu1 %v2411_v1  ;;  %v567_v22 = vrot.slane %v565_v9, 7  ;;  %v568_v23 = vshll.u32 %v2298_v61, 16  ;;  %v493_v24 = vsel %vm2689_vm6, 0, %v485_v13  ;;  %v2708_v26 = vsel %vm779_vm5, %v736_v14, 0 }
  0x3c   : > { %v719_v28 = vor.u32 %v718_v12, %v714_v11  ;;  %v1883_v29 = vcombine.low %v492_v17, %v493_v24  ;;  %v962_v30 = vrot.slane %v2621_v27, 1  ;;  %v704_v32 = vshll.u32 %v646_v19, 16 }
  0x3d   : > { %v560_v34 = vrot.slane %v558_v15, 7  ;;  %v561_v35 = vshll.u32 %v2299_v4, 16  ;;  %v963_v36 = vrot.slane %v2609_v20, 1  ;;  %v2714_v37 = vsel %vm779_vm5, %v2667_v56, 0 }
  0x3e   : > { %v709_v38 = vshll.u32 %v656_v21, 16  ;;  %v551_v39 = vshrl.u32 %v1883_v29, 16  ;;  %v959_v40 = vrot.slane %v2633_v33, 1  ;;  %v570_v42 = vor.u32 %v568_v23, %v567_v22 }
  0x3f   : > { %v554_v43 = vshll.u32 %v1883_v29, 16  ;;  %v2718_v44 = vsel %vm940_vm7, %v962_v30, %v963_v36  ;;  %v960_v27 = vrot.slane %v2617_v25, 1  ;;  %v724_v45 = vsel %vm664_vm3, %v719_v28, %v723_v18 }
  0x40   : > { %v702_v20 = vshrl.u32 %v646_v19, 16  ;;  %v553_v46 = vrot.slane %v551_v39, 7  ;;  %v706_v47 = vrot.slane %v704_v32, 1  ;;  %v563_v48 = vor.u32 %v561_v35, %v560_v34 }
  0x41   : > { %2014 = vmatpush3.bf16.xpose.msra.mxu0 %v2681_v0  ;;  %v2726_v33 = vsel %vm940_vm7, %v959_v40, %v960_v27  ;;  %v956_v49 = vrot.slane %v2643_v41, 1  ;;  %v711_v53 = vrot.slane %v709_v38, 1  ;;  %v957_v25 = vrot.slane %v2655_v51, 1 }
  0x42   : > { %2015 = vmatprep.subr.bf16.mxu0 %v2411_v1  ;;  %2036 = vmatpush3.bf16.xpose.msra.mxu1 %v2686_v5  ;;  %v645_v54 = vsel %vm2602_vm4, 0, %v570_v42  ;;  %v556_v55 = vor.u32 %v554_v43, %v553_v46  ;;  %v953_v57 = vrot.slane %v2667_v56, 1  ;;  %v954_v58 = vrot.slane %v2673_v60, 1  ;;  %v1906_v42 = vld [vmem:[%s3100_s3 + $0x1c] sm:$0xf] }
  0x43   : > { %2037 = vmatprep.subr.bf16.mxu1 %v2411_v1  ;;  %v2736_v59 = vsel %vm779_vm5, %v724_v45, 0  ;;  %v2739_v61 = vsel %vm779_vm5, %v646_v19, 0  ;;  %v2742_v41 = vsel %vm940_vm7, %v956_v49, %v957_v25  ;;  %v950_v62 = vrot.slane %v646_v19, 1  ;;  %1350 = vxpose.xlu1.c.b16.start.end [1/1] (short) (narrow) %v1906_v42, 16  ;;  %v487_v42 = vld [vmem:[%s462_s12 + $0x4] sm:$0xf] }
  0x44   : > { %v707_v63 = vor.u32 %v706_v47, %v702_v20  ;;  %v655_v51 = vsel %vm2602_vm4, %v567_v22, 0  ;;  %v644_v2 = vsel %vm2602_vm4, 0, %v563_v48  ;;  %v654_v56 = vsel %vm2602_vm4, %v560_v34, 0  ;;  %v1904_v34 = vld [vmem:[%s3100_s3 + $0x18] sm:$0xf] }
  0x45   : > { %v692_v60 = vshll.u32 %v645_v54, 16  ;;  %v2751_v3 = vsel %vm940_vm7, %v953_v57, %v954_v58  ;;  %v951_v4 = vrot.slane %v656_v21, 1  ;;  %v947_v6 = vrot.slane %v645_v54, 1  ;;  %1272 = vxpose.xlu0.c.b16.start.end [1/1] (short) (narrow) %v1904_v34, 16 }
  0x46   : > { %v643_v7 = vsel %vm2602_vm4, 0, %v556_v55  ;;  %v653_v8 = vsel %vm2602_vm4, %v553_v46, 0  ;;  %v948_v9 = vrot.slane %v655_v51, 1  ;;  %v944_v10 = vrot.slane %v644_v2, 1 }
  0x47   : > { %v2759_v11 = vsel %vm940_vm7, %v950_v62, %v951_v4  ;;  %v945_v12 = vrot.slane %v654_v56, 1  ;;  %v941_v13 = vrot.slane %v643_v7, 1  ;;  %v942_v14 = vrot.slane %v653_v8, 1  ;;  %v2300_v62 = vld [vmem:[%s2595_s22 + $0x38] sm:$0xff]   ;;  %s413_s22 = sand.u32 1, %s2385_s30   ;;  %s3129_s30 = sand.u32 1, %s2377_s28  }
  0x48   : > { %v690_v15 = vshrl.u32 %v645_v54, 16  ;;  %v697_v17 = vshll.u32 %v655_v51, 16  ;;  %v2764_v18 = vsel %vm940_vm7, %v947_v6, %v948_v9  ;;  %v712_v19 = vsel %vm664_vm3, %v707_v63, %v711_v53  ;;  %s1861_s9 = sshll.u32 %s413_s22, 4  ;;  %s3018_s20 = scalar_lea.vmem [#allocation4], %s3129_s30 }
  0x49   : > { %2016 = vmatpush3.bf16.xpose.msra.mxu0 %v2708_v26  ;;  %v694_v21 = vrot.slane %v692_v60, 1  ;;  %v2769_v22 = vsel %vm940_vm7, %v944_v10, %v945_v12  ;;  %v2772_v23 = vsel %vm940_vm7, %v941_v13, %v942_v14  ;;  %v2775_v24 = vsel %vm779_vm5, %v712_v19, 0  ;;  %s3012_s13 = scalar_lea.vmem [#allocation3], %s1861_s9 }
  0x4a   : > { %2017 = vmatprep.subr.bf16.mxu0 %v2411_v1  ;;  %2038 = vmatpush3.bf16.xpose.msra.mxu1 %v2714_v37  ;;  %v699_v29 = vrot.slane %v697_v17, 1  ;;  %v2778_v30 = vsel %vm779_vm5, %v645_v54, 0  ;;  %v680_v32 = vshll.u32 %v644_v2, 16  ;;  %v678_v36 = vshrl.u32 %v644_v2, 16 }
  0x4b   : > { %2039 = vmatprep.subr.bf16.mxu1 %v2411_v1  ;;  %v695_v28 = vor.u32 %v694_v21, %v690_v15  ;;  %v685_v39 = vshll.u32 %v654_v56, 16  ;;  %v2795_v45 = vsel %vm779_vm5, %v644_v2, 0  ;;  %v668_v20 = vshll.u32 %v643_v7, 16 }
  0x4c   : > { %v682_v38 = vrot.slane %v680_v32, 1  ;;  %v666_v47 = vshrl.u32 %v643_v7, 16  ;;  %v673_v49 = vshll.u32 %v653_v8, 16  ;;  %v867_v55 = vsel %vm779_vm5, %v643_v7, 0 }
  0x4d   : > { %v700_v35 = vsel %vm664_vm3, %v695_v28, %v699_v29  ;;  %v687_v27 = vrot.slane %v685_v39, 1  ;;  %v670_v48 = vrot.slane %v668_v20, 1  ;;  %v607_v63 = vshrl.u32 %v2300_v62, 16  ;;  %v486_v39 = vld [vmem:[%s462_s12] sm:$0xf] }
  0x4e   : > { %v2789_v40 = vsel %vm779_vm5, %v700_v35, 0  ;;  %v683_v43 = vor.u32 %v682_v38, %v678_v36  ;;  %v675_v54 = vrot.slane %v673_v49, 1  ;;  %v610_v2 = vshll.u32 %v2300_v62, 16 }
  0x4f   : > { %v671_v25 = vor.u32 %v670_v48, %v666_v47  ;;  %v609_v51 = vrot.slane %v607_v63, 7  ;;  %v2815_v60 = vsel %vm779_vm5, %v2718_v44, 0  ;;  %v2833_v44 = vsel %vm779_vm5, %v2726_v33, 0 }
  0x50   : > { %v688_v46 = vsel %vm664_vm3, %v683_v43, %v687_v27  ;;  %v2841_v9 = vsel %vm779_vm5, %v2742_v41, 0  ;;  %v2849_v33 = vsel %vm779_vm5, %v2751_v3, 0  ;;  %v1908_v41 = vld [vmem:[%s3100_s3 + $0x20] sm:$0xf]  ;;  %v2860_v10 = vsel %vm779_vm5, %v2759_v11, 0 }
  0x51   : > { %2018 = vmatpush3.bf16.xpose.msra.mxu0 %v2736_v59  ;;  %v2803_v53 = vsel %vm779_vm5, %v688_v46, 0  ;;  %v676_v57 = vsel %vm664_vm3, %v671_v25, %v675_v54  ;;  %v612_v56 = vor.u32 %v610_v2, %v609_v51  ;;  %1422 = vxpose.xlu0.c.b16.start.end [1/1] (short) (narrow) %v1908_v41, 16  ;;  %v2868_v3 = vsel %vm779_vm5, %v2764_v18, 0 }
  0x52   : > { %2019 = vmatprep.subr.bf16.mxu0 %v2411_v1  ;;  %2040 = vmatpush3.bf16.xpose.msra.mxu1 %v2739_v61  ;;  %v784_v58 = vsel %vm779_vm5, %v676_v57, 0  ;;  %v2876_v11 = vsel %vm779_vm5, %v2769_v22, 0  ;;  %v661_v13 = vsel %vm2602_vm4, %v609_v51, 0  ;;  %v987_v18 = vsel %vm779_vm5, %v2772_v23, 0 }
  0x53   : > { %2041 = vmatprep.subr.bf16.mxu1 %v2411_v1  ;;  %v651_v6 = vsel %vm2602_vm4, 0, %v612_v56  ;;  %v1127_v17 = vshll.u32 %v661_v13, 16  ;;  %v1201_v32 = vrot.slane %v661_v13, 1  ;;  %v496_v38 = vstv %s495_s18 }
  0x54   : > { %v2824_v7 = vsel %vm779_vm5, %v651_v6, 0  ;;  %v1122_v12 = vshll.u32 %v651_v6, 16  ;;  %v1120_v14 = vshrl.u32 %v651_v6, 16  ;;  %v1200_v29 = vrot.slane %v651_v6, 1 }
  0x55   : > { %v1129_v21 = vrot.slane %v1127_v17, 1  ;;  %vm497_vm8 = vcmp.eq.s32.totalorder %v496_v38, 1  ;;  %v2413_v6 = vmov 0  }
  0x56   : > { %v1124_v15 = vrot.slane %v1122_v12, 1  ;;  %v1202_v23 = vsel %vm940_vm7, %v1200_v29, %v1201_v32  ;;  %v498_v43 = vsel %vm497_vm8, 0, %v486_v39  ;;  %v499_v27 = vsel %vm497_vm8, 0, %v487_v42  ;;  %2291 = vset.pattern.permute.xlu1 %v2413_v6 }
  0x57   : > { %v2901_v36 = vsel %vm779_vm5, %v1202_v23, 0 }
  0x58   : > { %v1125_v19 = vor.u32 %v1124_v15, %v1120_v14 }
  0x59   : > { %2020 = vmatpush3.bf16.xpose.msra.mxu0 %v2775_v24 }
  0x5a   : > { %2021 = vmatprep.subr.bf16.mxu0 %v2411_v1  ;;  %2042 = vmatpush3.bf16.xpose.msra.mxu1 %v2778_v30  ;;  %v1130_v28 = vsel %vm664_vm3, %v1125_v19, %v1129_v21 }
  0x5b   : > { %2043 = vmatprep.subr.bf16.mxu1 %v2411_v1  ;;  %v2891_v34 = vsel %vm779_vm5, %v1130_v28, 0  ;;  %2292 = vset.pattern.permute.xlu0 %v2413_v6 }
  0x61   : > { %2022 = vmatpush3.bf16.xpose.msra.mxu0 %v2789_v40 }
  0x62   : > { %2023 = vmatprep.subr.bf16.mxu0 %v2411_v1  ;;  %2044 = vmatpush3.bf16.xpose.msra.mxu1 %v2795_v45 }
  0x63   : > { %2045 = vmatprep.subr.bf16.mxu1 %v2411_v1 }
  0x69   : > { %2024 = vmatpush3.bf16.xpose.msra.mxu0 %v2803_v53 }
  0x6a   : > { %2025 = vmatprep.subr.bf16.mxu0 %v2411_v1  ;;  %2046 = vmatpush3.bf16.xpose.msra.mxu1 %v867_v55 }
  0x6b   : > { %2071 = vmatprep.subr.bf16.mxu1 %v2411_v1 }
  0x71   : > { %2026 = vmatpush3.bf16.xpose.msra.mxu0 %v784_v58 }
  0x72   : > { %2051 = vmatprep.subr.bf16.mxu0 %v2411_v1 }
  0x84   : > { %v771_v4 = vpop.trf.xlu0 }
  0x85   : > { %2028 = vmatmul.mubr.msk.bf16.vlgmr.msra.gmra.mxu0 %vm779_vm5, %v771_v4 }
  0x86   : > { %2052 = vmatpush3.bf16.xpose.msra.mxu0 %v2815_v60  ;;  %2067 = vmatprep.mubr.msk.bf16.mxu0 %vm2412_vm0, %v2411_v1  ;;  %v975_v22 = vpop.trf.xlu1 }
  0x87   : > { %2053 = vmatprep.subr.bf16.mxu0 %v2411_v1 }
  0x88   : > { %v856_v8 = vpop.trf.xlu0 }
  0x89   : > { %2048 = vmatmul.mubr.msk.bf16.vlgmr.msra.gmra.mxu1 %vm779_vm5, %v856_v8 }
  0x8a   : > { %2072 = vmatpush3.bf16.xpose.msra.mxu1 %v2824_v7  ;;  %2087 = vmatprep.mubr.msk.bf16.mxu1 %vm2412_vm0, %v2411_v1  ;;  %v1063_v35 = vpop.trf.xlu1 }
  0x8b   : > { %2073 = vmatprep.subr.bf16.mxu1 %v2411_v1 }
  0x8c   : > { %v1141_v51 = vpop.trf.xlu0 }
  0x8e   : > { %2054 = vmatpush3.bf16.xpose.msra.mxu0 %v2833_v44  ;;  %v1213_v56 = vpop.trf.xlu1 }
  0x8f   : > { %2055 = vmatprep.subr.bf16.mxu0 %v2411_v1 }
  0x92   : > { %2074 = vmatpush3.bf16.xpose.msra.mxu1 %v2628_v31 }
  0x93   : > { %2075 = vmatprep.subr.bf16.mxu1 %v2411_v1 }
  0x96   : > { %2056 = vmatpush3.bf16.xpose.msra.mxu0 %v2841_v9 }
  0x97   : > { %2057 = vmatprep.subr.bf16.mxu0 %v2411_v1 }
  0x9a   : > { %2076 = vmatpush3.bf16.xpose.msra.mxu1 %v2651_v50 }
  0x9b   : > { %2077 = vmatprep.subr.bf16.mxu1 %v2411_v1 }
  0x9e   : > { %2058 = vmatpush3.bf16.xpose.msra.mxu0 %v2849_v33 }
  0x9f   : > { %2059 = vmatprep.subr.bf16.mxu0 %v2411_v1 }
  0xa2   : > { %2078 = vmatpush3.bf16.xpose.msra.mxu1 %v2686_v5 }
  0xa3   : > { %2079 = vmatprep.subr.bf16.mxu1 %v2411_v1 }
  0xa6   : > { %2060 = vmatpush3.bf16.xpose.msra.mxu0 %v2860_v10 }
  0xa7   : > { %2061 = vmatprep.subr.bf16.mxu0 %v2411_v1 }
  0xaa   : > { %2080 = vmatpush3.bf16.xpose.msra.mxu1 %v2714_v37 }
  0xab   : > { %2081 = vmatprep.subr.bf16.mxu1 %v2411_v1 }
  0xae   : > { %2062 = vmatpush3.bf16.xpose.msra.mxu0 %v2868_v3 }
  0xaf   : > { %2063 = vmatprep.subr.bf16.mxu0 %v2411_v1 }
  0xb2   : > { %2082 = vmatpush3.bf16.xpose.msra.mxu1 %v2739_v61 }
  0xb3   : > { %2083 = vmatprep.subr.bf16.mxu1 %v2411_v1 }
  0xb6   : > { %2064 = vmatpush3.bf16.xpose.msra.mxu0 %v2876_v11 }
  0xb7   : > { %2065 = vmatprep.subr.bf16.mxu0 %v2411_v1 }
  0xba   : > { %2084 = vmatpush3.bf16.xpose.msra.mxu1 %v2778_v30 }
  0xbb   : > { %2085 = vmatprep.subr.bf16.mxu1 %v2411_v1 }
  0xbe   : > { %2066 = vmatpush3.bf16.xpose.msra.mxu0 %v987_v18 }
  0xbf   : > { %2091 = vmatprep.subr.bf16.mxu0 %v2411_v1 }
  0xc2   : > { %2086 = vmatpush3.bf16.xpose.msra.mxu1 %v2795_v45  ;;  %v1892_v45 = vcombine.low %v498_v43, %v499_v27 }
  0xc3   : > { %2111 = vmatprep.subr.bf16.mxu1 %v2411_v1 }
  0xc4   : > { %v614_v20 = vshrl.u32 %v1892_v45, 16  ;;  %v617_v47 = vshll.u32 %v1892_v45, 16 }
  0xc5   : > { %2068 = vmatmul.mubr.msk.bf16.vlgmr.msra.gmra.mxu0 %vm779_vm5, %v975_v22 }
  0xc6   : > { %2092 = vmatpush3.bf16.xpose.msra.mxu0 %v2891_v34  ;;  %2107 = vmatprep.mubr.msk.bf16.mxu0 %vm2412_vm0, %v2411_v1  ;;  %v616_v46 = vrot.slane %v614_v20, 7 }
  0xc7   : > { %2093 = vmatprep.subr.bf16.mxu0 %v2411_v1 }
  0xc8   : > { %v619_v48 = vor.u32 %v617_v47, %v616_v46  ;;  %v662_v54 = vsel %vm2602_vm4, %v616_v46, 0 }
  0xc9   : > { %2088 = vmatmul.mubr.msk.bf16.vlgmr.msra.gmra.mxu1 %vm779_vm5, %v1063_v35  ;;  %v1344_v58 = vshll.u32 %v662_v54, 16 }
  0xca   : > { %2112 = vmatpush3.bf16.xpose.msra.mxu1 %v2901_v36  ;;  %2127 = vmatprep.mubr.msk.bf16.mxu1 %vm2412_vm0, %v2411_v1  ;;  %v652_v49 = vsel %vm2602_vm4, 0, %v619_v48 }
  0xcb   : > { %2113 = vmatprep.subr.bf16.mxu1 %v2411_v1  ;;  %v1339_v25 = vshll.u32 %v652_v49, 16  ;;  %v1337_v55 = vshrl.u32 %v652_v49, 16  ;;  %v1346_v63 = vrot.slane %v1344_v58, 1  ;;  %v1292_v2 = vsel %vm779_vm5, %v652_v49, 0 }
  0xcd   : > { %v1341_v57 = vrot.slane %v1339_v25, 1 }
  0xce   : > { %2094 = vmatpush3.bf16.xpose.msra.mxu0 %v2658_v52 }
  0xcf   : > { %2095 = vmatprep.subr.bf16.mxu0 %v2411_v1  ;;  %v1342_v62 = vor.u32 %v1341_v57, %v1337_v55 }
  0xd1   : > { %v1347_v16 = vsel %vm664_vm3, %v1342_v62, %v1346_v63 }
  0xd2   : > { %2114 = vmatpush3.bf16.xpose.msra.mxu1 %v2815_v60 }
  0xd3   : > { %2115 = vmatprep.subr.bf16.mxu1 %v2411_v1 }
  0xd6   : > { %2096 = vmatpush3.bf16.xpose.msra.mxu0 %v2681_v0 }
  0xd7   : > { %2097 = vmatprep.subr.bf16.mxu0 %v2411_v1 }
  0xda   : > { %2116 = vmatpush3.bf16.xpose.msra.mxu1 %v2833_v44 }
  0xdb   : > { %2117 = vmatprep.subr.bf16.mxu1 %v2411_v1 }
  0xde   : > { %2098 = vmatpush3.bf16.xpose.msra.mxu0 %v2708_v26 }
  0xdf   : > { %2099 = vmatprep.subr.bf16.mxu0 %v2411_v1 }
  0xe2   : > { %2118 = vmatpush3.bf16.xpose.msra.mxu1 %v2841_v9 }
  0xe3   : > { %2119 = vmatprep.subr.bf16.mxu1 %v2411_v1 }
  0xe6   : > { %2100 = vmatpush3.bf16.xpose.msra.mxu0 %v2736_v59 }
  0xe7   : > { %2101 = vmatprep.subr.bf16.mxu0 %v2411_v1 }
  0xea   : > { %2120 = vmatpush3.bf16.xpose.msra.mxu1 %v2849_v33 }
  0xeb   : > { %2121 = vmatprep.subr.bf16.mxu1 %v2411_v1 }
  0xee   : > { %2102 = vmatpush3.bf16.xpose.msra.mxu0 %v2775_v24 }
  0xef   : > { %2103 = vmatprep.subr.bf16.mxu0 %v2411_v1 }
  0xf2   : > { %2122 = vmatpush3.bf16.xpose.msra.mxu1 %v2860_v10 }
  0xf3   : > { %2123 = vmatprep.subr.bf16.mxu1 %v2411_v1 }
  0xf6   : > { %2104 = vmatpush3.bf16.xpose.msra.mxu0 %v2789_v40 }
  0xf7   : > { %2105 = vmatprep.subr.bf16.mxu0 %v2411_v1 }
  0xfa   : > { %2124 = vmatpush3.bf16.xpose.msra.mxu1 %v2868_v3 }
  0xfb   : > { %2125 = vmatprep.subr.bf16.mxu1 %v2411_v1 }
  0xfe   : > { %2106 = vmatpush3.bf16.xpose.msra.mxu0 %v2803_v53  ;;  %v1370_v53 = vsel %vm779_vm5, %v1347_v16, 0 }
  0xff   : > { %2131 = vmatprep.subr.bf16.mxu0 %v2411_v1 }
 0x102   : > { %2126 = vmatpush3.bf16.xpose.msra.mxu1 %v2876_v11  ;;  %v1488_v11 = vld [vmem:[%s3101_s4 + $0x8] sm:$0xff] }
 0x103   : > { %2151 = vmatprep.subr.bf16.mxu1 %v2411_v1  ;;  %1496 = vperm.xlu0 %2292, %v1488_v11  }
 0x105   : > { %2108 = vmatmul.mubr.msk.bf16.vlgmr.msra.gmra.mxu0 %vm779_vm5, %v1141_v51 }
 0x106   : > { %2132 = vmatpush3.bf16.xpose.msra.mxu0 %v1292_v2  ;;  %2147 = vmatprep.mubr.msk.bf16.mxu0 %vm2412_vm0, %v2411_v1 }
 0x107   : > { %2133 = vmatprep.subr.bf16.mxu0 %v2411_v1 }
 0x109   : > { %2128 = vmatmul.mubr.msk.bf16.vlgmr.msra.gmra.mxu1 %vm779_vm5, %v1213_v56 }
 0x10a   : > { %2152 = vmatpush3.bf16.xpose.msra.mxu1 %v1370_v53  ;;  %2167 = vmatprep.mubr.msk.bf16.mxu1 %vm2412_vm0, %v2411_v1 }
 0x10b   : > { %2153 = vmatprep.subr.bf16.mxu1 %v2411_v1 }
 0x10e   : > { %2134 = vmatpush3.bf16.xpose.msra.mxu0 %v2824_v7  ;;  %v1487_v7 = vld [vmem:[%s3101_s4] sm:$0xff] }
 0x10f   : > { %2135 = vmatprep.subr.bf16.mxu0 %v2411_v1  ;;  %1491 = vperm.xlu1 %2291, %v1487_v7  }
 0x112   : > { %2154 = vmatpush3.bf16.xpose.msra.mxu1 %v2891_v34 }
 0x113   : > { %2155 = vmatprep.subr.bf16.mxu1 %v2411_v1 }
 0x116   : > { %2136 = vmatpush3.bf16.xpose.msra.mxu0 %v2628_v31  ;;  %v1417_v31 = vrot.slane %v652_v49, 1 }
 0x117   : > { %2137 = vmatprep.subr.bf16.mxu0 %v2411_v1 }
 0x11a   : > { %2156 = vmatpush3.bf16.xpose.msra.mxu1 %v2658_v52 }
 0x11b   : > { %2157 = vmatprep.subr.bf16.mxu1 %v2411_v1 }
 0x11e   : > { %2138 = vmatpush3.bf16.xpose.msra.mxu0 %v2651_v50  ;;  %v1418_v50 = vrot.slane %v662_v54, 1 }
 0x11f   : > { %2139 = vmatprep.subr.bf16.mxu0 %v2411_v1 }
 0x120   : > { %v1419_v52 = vsel %vm940_vm7, %v1417_v31, %v1418_v50 }
 0x122   : > { %2158 = vmatpush3.bf16.xpose.msra.mxu1 %v2681_v0  ;;  %v1280_v0 = vpop.trf.xlu0 }
 0x123   : > { %2159 = vmatprep.subr.bf16.mxu1 %v2411_v1 }
 0x126   : > { %2140 = vmatpush3.bf16.xpose.msra.mxu0 %v2686_v5  ;;  %v1442_v5 = vsel %vm779_vm5, %v1419_v52, 0 }
 0x127   : > { %2141 = vmatprep.subr.bf16.mxu0 %v2411_v1 }
 0x12a   : > { %2160 = vmatpush3.bf16.xpose.msra.mxu1 %v2708_v26 }
 0x12b   : > { %2161 = vmatprep.subr.bf16.mxu1 %v2411_v1 }
 0x12e   : > { %2142 = vmatpush3.bf16.xpose.msra.mxu0 %v2714_v37  ;;  %v1358_v37 = vpop.trf.xlu1 }
 0x12f   : > { %2143 = vmatprep.subr.bf16.mxu0 %v2411_v1 }
 0x132   : > { %2162 = vmatpush3.bf16.xpose.msra.mxu1 %v2736_v59 }
 0x133   : > { %2163 = vmatprep.subr.bf16.mxu1 %v2411_v1 }
 0x136   : > { %2144 = vmatpush3.bf16.xpose.msra.mxu0 %v2739_v61 }
 0x137   : > { %2145 = vmatprep.subr.bf16.mxu0 %v2411_v1 }
 0x13a   : > { %2164 = vmatpush3.bf16.xpose.msra.mxu1 %v2775_v24 }
 0x13b   : > { %2165 = vmatprep.subr.bf16.mxu1 %v2411_v1 }
 0x13e   : > { %2146 = vmatpush3.bf16.xpose.msra.mxu0 %v2778_v30 }
 0x13f   : > { %2171 = vmatprep.subr.bf16.mxu0 %v2411_v1 }
 0x142   : > { %2166 = vmatpush3.bf16.xpose.msra.mxu1 %v2789_v40 }
 0x145   : > { %2148 = vmatmul.mubr.msk.bf16.vlgmr.msra.gmra.mxu0 %vm779_vm5, %v1280_v0  ;;  %v841_v26 = vpop.f32.mrf.mxu0 }
 0x146   : > { %2172 = vmatpush3.bf16.xpose.msra.mxu0 %v1442_v5  ;;  %2187 = vmatprep.mubr.msk.bf16.mxu0 %vm2412_vm0, %v2411_v1 }
 0x147   : > { %v2029_v59 = vpop.f32.mrf.mxu0  ;;  %2173 = vmatprep.subr.bf16.mxu0 %v2411_v1 }
 0x149   : > { %2168 = vmatmul.mubr.msk.bf16.vlgmr.msra.gmra.mxu1 %vm779_vm5, %v1358_v37  ;;  %v844_v61 = vpop.f32.mrf.mxu0  ;;  %v917_v24 = vpop.f32.mrf.mxu1 }
 0x14a   : > { %v918_v30 = vadd.f32 %v917_v24, %v841_v26 }
 0x14b   : > { %v2030_v40 = vpop.f32.mrf.mxu0  ;;  %v2049_v4 = vpop.f32.mrf.mxu1 }
 0x14d   : > { %v920_v8 = vpop.f32.mrf.mxu1 }
 0x14e   : > { %v921_v41 = vadd.f32 %v920_v8, %v844_v61  ;;  %2174 = vmatpush3.bf16.xpose.msra.mxu0 %v2901_v36 }
 0x14f   : > { %2175 = vmatprep.subr.bf16.mxu0 %v2411_v1  ;;  %v2050_v12 = vpop.f32.mrf.mxu1 }
 0x156   : > { %2176 = vmatpush3.bf16.xpose.msra.mxu0 %v2815_v60  ;;  %v1430_v60 = vpop.trf.xlu0 }
 0x157   : > { %2177 = vmatprep.subr.bf16.mxu0 %v2411_v1 }
 0x15e   : > { %2178 = vmatpush3.bf16.xpose.msra.mxu0 %v2833_v44 }
 0x15f   : > { %2179 = vmatprep.subr.bf16.mxu0 %v2411_v1 }
 0x166   : > { %2180 = vmatpush3.bf16.xpose.msra.mxu0 %v2841_v9 }
 0x167   : > { %2181 = vmatprep.subr.bf16.mxu0 %v2411_v1 }
 0x16e   : > { %2182 = vmatpush3.bf16.xpose.msra.mxu0 %v2849_v33 }
 0x16f   : > { %2183 = vmatprep.subr.bf16.mxu0 %v2411_v1 }
 0x176   : > { %2184 = vmatpush3.bf16.xpose.msra.mxu0 %v2860_v10 }
 0x177   : > { %2185 = vmatprep.subr.bf16.mxu0 %v2411_v1 }
 0x17e   : > { %2186 = vmatpush3.bf16.xpose.msra.mxu0 %v2868_v3  ;;  %v1497_v56 = vpop.permute.xlu0 %1496 }
 0x185   : > { %v1044_v13 = vpop.f32.mrf.mxu0  ;;  %2188 = vmatmul.mubr.msk.bf16.vlgmr.msra.gmra.mxu0 %vm779_vm5, %v1430_v60 }
 0x186   : > { %v1051_v44 = vadd.f32 %v1044_v13, %v918_v30 }
 0x187   : > { %v2069_v14 = vpop.f32.mrf.mxu0 }
 0x189   : > { %v1047_v15 = vpop.f32.mrf.mxu0  ;;  %v1111_v9 = vpop.f32.mrf.mxu1 }
 0x18a   : > { %v1052_v17 = vadd.f32 %v1047_v15, %v921_v41  ;;  %v1118_v18 = vadd.f32 %v1111_v9, %v1051_v44  ;;  %v1492_v57 = vpop.permute.xlu1 %1491 }
 0x18b   : > { %v2070_v19 = vpop.f32.mrf.mxu0  ;;  %v2089_v33 = vpop.f32.mrf.mxu1 }
 0x18d   : > { %v1114_v21 = vpop.f32.mrf.mxu1 }
 0x18e   : > { %v1119_v22 = vadd.f32 %v1114_v21, %v1052_v17 }
 0x18f   : > { %v2090_v28 = vpop.f32.mrf.mxu1 }
 0x1c5   : > { %v1189_v10 = vpop.f32.mrf.mxu0 }
 0x1c6   : > { %v1196_v29 = vadd.f32 %v1189_v10, %v1118_v18 }
 0x1c7   : > { %v2109_v1 = vpop.f32.mrf.mxu0 }
 0x1c9   : > { %v1192_v32 = vpop.f32.mrf.mxu0  ;;  %v1261_v3 = vpop.f32.mrf.mxu1 }
 0x1ca   : > { %v1197_v34 = vadd.f32 %v1192_v32, %v1119_v22  ;;  %v1268_v23 = vadd.f32 %v1261_v3, %v1196_v29 }
 0x1cb   : > { %v2110_v35 = vpop.f32.mrf.mxu0  ;;  %v2129_v36 = vpop.f32.mrf.mxu1 }
 0x1cd   : > { %v1264_v38 = vpop.f32.mrf.mxu1 }
 0x1ce   : > { %v1269_v39 = vadd.f32 %v1264_v38, %v1197_v34 }
 0x1cf   : > { %v2130_v42 = vpop.f32.mrf.mxu1 }
 0x205   : > { %v1328_v43 = vpop.f32.mrf.mxu0 }
 0x206   : > { %v1335_v25 = vadd.f32 %v1328_v43, %v1268_v23 }
 0x207   : > { %v2149_v27 = vpop.f32.mrf.mxu0 }
 0x209   : > { %v1331_v45 = vpop.f32.mrf.mxu0  ;;  %v1406_v20 = vpop.f32.mrf.mxu1 }
 0x20a   : > { %v1413_v54 = vadd.f32 %v1406_v20, %v1335_v25  ;;  %v1336_v58 = vadd.f32 %v1331_v45, %v1269_v39 }
 0x20b   : > { %v2150_v46 = vpop.f32.mrf.mxu0  ;;  %v2169_v47 = vpop.f32.mrf.mxu1 }
 0x20d   : > { %v1409_v48 = vpop.f32.mrf.mxu1 }
 0x20e   : > { %v1414_v51 = vadd.f32 %v1409_v48, %v1336_v58 }
 0x20f   : > { %v2170_v49 = vpop.f32.mrf.mxu1 }
 0x245   : > { %v1478_v55 = vpop.f32.mrf.mxu0 }
 0x246   : > { %v1485_v62 = vadd.f32 %v1478_v55, %v1413_v54 }
 0x247   : > { %v2189_v63 = vpop.f32.mrf.mxu0 }
 0x248   : > { %v1499_v2 = vadd.f32 %v1492_v57, %v1485_v62 }
 0x249   : > { %v1481_v16 = vpop.f32.mrf.mxu0 }
 0x24a   : > { %v1501_v53 = vmax.f32 %v1499_v2, 0.0  ;;  %v1486_v31 = vadd.f32 %v1481_v16, %v1414_v51 }
 0x24b   : > { %v2190_v50 = vpop.f32.mrf.mxu0 }
 0x24c   : > { %v1503_v52 = vmin.f32 %v1501_v53, 6.0  ;;  %v1500_v0 = vadd.f32 %v1497_v56, %v1486_v31 }
 0x24e   : > { %1505 = vst [vmem:[%s3012_s13] sm:$0xff] %v1503_v52  ;;  %v1502_v5 = vmax.f32 %v1500_v0, 0.0  ;;  %1509 = sbr.rel (%p1910_p10) target bundleno = 597 (0x255), region = 52 }
 0x250   : > { %v1504_v26 = vmin.f32 %v1502_v5, 6.0 }
 0x252   : > { %1506 = vst [vmem:[%s3012_s13 + $0x8] sm:$0xff] %v1504_v26 }
 0x253   : > { %vm1510_vm9 = vcmask 7168   ;;  %v2414_v37 = vmov 0.0  }
 0x254   : > { %1511 = vst.msk [vmem:[#allocation2] sm:$0xff] %vm1510_vm9, %v2414_v37  ;;  %1512 = vst.msk [vmem:[#allocation2 + $0x8] sm:$0xff] %vm1510_vm9, %v2414_v37 }
 0x255 PF: > { %1515 = vadd.xlane.f32.xlu0 %v1503_v52  ;;  %vm1521_vm10 = vcmask 7168   ;;  %p1911_p11 = scmp.ne.s32.totalorder %s2393_s10, 1 }
 0x259   : > { %1517 = vadd.xlane.f32.xlu0 %v1504_v26 }
 0x25b   : > { %v1513_v59 = vld [vmem:[#allocation2] sm:$0xff]  ;;  %v1514_v30 = vld [vmem:[#allocation2 + $0x8] sm:$0xff] }
 0x2de   : > { %v1516_v61 = vpop.xlane.xlu0 %1515 }
 0x2df   : > { %v1519_v24 = vadd.f32 %v1516_v61, %v1513_v59 }
 0x2e1   : > { %1522 = vst.msk [vmem:[#allocation2] sm:$0xff] %vm1521_vm10, %v1519_v24  ;;  %1526 = sbr.rel (%p1911_p11) target bundleno = 1068 (0x42c), region = 56 }
 0x2e2   : > { %v1518_v40 = vpop.xlane.xlu0 %1517 }
 0x2e3   : > { %v1520_v4 = vadd.f32 %v1518_v40, %v1514_v30 }
 0x2e5   : > { %1523 = vst.msk [vmem:[#allocation2 + $0x8] sm:$0xff] %vm1521_vm10, %v1520_v4 }
 0x2e6   : > { %v1532_v8 = vld [vmem:[%s3102_s5 + $0x8] sm:$0xff]  ;;  %v2415_v11 = vmov 0.0   ;;  %v1531_v12 = vld [vmem:[%s3102_s5] sm:$0xff]  ;;  %vm2416_vm11 = vmmov 0   ;;  %vm1566_vm12 = vcmask 130048   ;;  %vm1640_vm13 = vcmask 122880  }
 0x2e7   : > { %2191 = vmatprep.subr.mxu0 %v2415_v11  ;;  %2195 = vmatprep.mubr.msk.f32.mxu0 %vm2416_vm11, %v2415_v11  ;;  %v1533_v44 = vld [vmem:[%s3103_s6] sm:$0x1] }
 0x2e8   : > { %v1527_v6 = vld [vmem:[#allocation2] sm:$0xff]  ;;  %2192 = vmatpush3.msra.mxu0 %v1532_v8 }
 0x2e9   : > { %v1529_v41 = vmul.f32 0.00390625, %v1527_v6  ;;  %2193 = vmatprep.subr.mxu0 %v2415_v11 }
 0x2ea   : > { %2194 = vmatpush3.msra.mxu0 %v1531_v12 }
 0x2eb   : > { %1534 = vxpose.xlu0.b32.start [1/2] (short) (narrow) %v1529_v41, 8 }
 0x2ec   : > { %v1528_v7 = vld [vmem:[#allocation2 + $0x8] sm:$0xff] }
 0x2ed   : > { %v1530_v60 = vmul.f32 0.00390625, %v1528_v7 }
 0x2ef   : > { %1535 = vxpose.xlu0.b32.end [2/2] (short) (narrow) %v1530_v60, 8 }
 0x367   : > { %v1550_v13 = vpop.trf.xlu0 }
 0x368   : > { %2196 = vmatmul.mubr.msk.f32.vlgmr.msra.gmra.mxu0 %vm1566_vm12, %v1550_v13 }
 0x428   : > { %v1636_v14 = vpop.f32.mrf.mxu0 }
 0x429   : > { %v1637_v15 = vadd.f32 %v1636_v14, %v1533_v44 }
 0x42a   : > { %v2197_v9 = vpop.f32.mrf.mxu0 }
 0x42b   : > { %1641 = vst.msk [vmem:[%s3018_s20] sm:$0x1] %vm1640_vm13, %v1637_v15 }
 0x42c PF: > { %s3130_s16 = sand.u32 1, %s2377_s28   ;;  %1652 = sbr.rel (!%p2525_p3) target bundleno = 1074 (0x432), region = 60  ;;  %v1687_v17 = vld [vmem:[%s3012_s13] sm:$0xff] (%p2525_p3)  ;;  %v1689_v18 = vld [vmem:[%s3012_s13 + $0x8] sm:$0xff] (%p2525_p3) }
 0x42d   : > { %s3034_s19 = scalar_lea.sflag [#allocation5], %s3130_s16  ;;  %s1914_s24 = sshll.u32 (%p2525_p3), %s2397_s11, 2 }
 0x42e   : > { %s1654_s29 = sadd.s32 (%p2525_p3), %s2393_s10, %s1914_s24 }
 0x42f   : > { %s1915_s22 = sshll.u32 (%p2525_p3), %s1654_s29, 3 }
 0x430   : > { %s1656_s17 = scalar_lea.vmem (%p2525_p3), %s3104_s7, %s1915_s22 }
 0x431   : > { %1688 = vst [vmem:[%s1656_s17] sm:$0xff] %v1687_v17  ;;  %1690 = vst [vmem:[%s1656_s17 + $0x10] sm:$0xff] %v1689_v18 }
 0x432 PF: > { %s1916_s21 = sshll.u32 %s2397_s11, 4  ;;  %s1703_s18 = sshll.u32 %s3018_s20, 4  ;;  %s1704_s18 = int_to_ptr.vmem [resolvable:$true] %s1703_s18 }
 0x433   : > { %s1701_s27 = scalar_lea.hbm %s3105_s8, %s1916_s21  ;;  %s2301_s10 = scalar_lea.vmem %s1704_s18, 16 }
 0x434   : > { %p2302_p3 = scmp.ne.s32.totalorder %s1704_s18, %s2301_s10  ;;  %s2417_s13 = smov [#allocation4]  }
 0x435   : > { %s2305_s12 = sshll.u32 %s2417_s13, 4  ;;  %s2306_s12 = int_to_ptr.vmem [resolvable:$false] %s2305_s12 }
 0x436   : > { %p2303_p13 = pnand %p2302_p3, %p2536_p7  ;;  %s2307_s16 = scalar_lea.vmem %s2306_s12, 32 }
 0x437   : > { %p2308_p1 = scmp.lt.s32.totalorder %s1704_s18, %s2306_s12  ;;  %p2309_p2 = scmp.lt.s32.totalorder %s2307_s16, %s2301_s10 }
 0x438   : > { %p2304_p0 = pneg %p2303_p13 }
 0x439   : > { %p2310_p4 = por %p2309_p2, %p2308_p1 }
 0x43b   : > { %p2311_p5 = pnand %p2310_p4, %p2304_p0 }
 0x43d   : > { %2314 = shalt.err (!%p2311_p5)
}
 0x43e   : > { %s2315_s11 = scalar_lea.hbm %s1701_s27, 16  ;;  %s2319_s29 = scalar_lea.hbm %s3105_s8, 32 }
 0x43f   : > { %p2316_p6 = scmp.ne.s32.totalorder %s1701_s27, %s2315_s11  ;;  %p2320_p10 = scmp.lt.s32.totalorder %s1701_s27, %s3105_s8 }
 0x440   : > { %p2321_p11 = scmp.lt.s32.totalorder %s2319_s29, %s2315_s11 }
 0x441   : > { %p2317_p8 = pnand %p2316_p6, %p2536_p7 }
 0x442   : > { %p2322_p3 = por %p2321_p11, %p2320_p10 }
 0x443   : > { %p2318_p9 = pneg %p2317_p8 }
 0x445   : > { %p2323_p13 = pnand %p2322_p3, %p2318_p9 }
 0x447   : > { %2326 = shalt.err (!%p2323_p13)
}
 0x448   : > { %2198 = dma.vmem_to_hbm [thread:$0]  (%p2536_p7), %s1704_s18, 16, %s1701_s27, %s3034_s19  }
 0x449 PF: > { %s3131_s30 = sld [smem:[#allocation7_spill]]  ;;  %p2204_p0 = scmp.ge.s32.totalorder %s2409_s14, 2 }
 0x44b   : > { %p2201_p1 = pnand %p2204_p0, %p2543_p12 }
 0x44d   : > { %p2202_p2 = pneg %p2201_p1 }
 0x44f   : > { %s1722_s17 = sand.u32 1, %s3131_s30  }
 0x450   : > { %s1723_s21 = scalar_lea.sflag [#allocation5], %s1722_s17 }
 0x451   : > { %2368 = dma.done.wait (%p2202_p2), %s1723_s21, 16  }
 0x452   : > { %2370 = vsyncadd (%p2202_p2), %s1723_s21, 4294967280  ;;  %s22_s14 = sadd.s32 1, %s2409_s14   ;;  %s3132_s15 = sld [smem:[#allocation8_spill]] }
 0x453   : > { %p19_p4 = scmp.ge.s32.totalorder %s22_s14, 6   ;;  %s3133_s29 = sld [smem:[#allocation14_spill]] }
 0x454   : > { %s3134_s30 = sld [smem:[#allocation9_spill]]  ;;  %s3140_s27 = smov %s2377_s28 }
 0x455   : > { %s3135_s9 = sld [smem:[#allocation15_spill]]  ;;  %21 = sbr.rel (!%p19_p4) target bundleno = 6 (0x6), region = 155 }
 0x456   : > { %s3136_s10 = sld [smem:[#allocation10_spill]] }
 0x457   : > { %s3137_s11 = sld [smem:[#allocation11_spill]] }
 0x458   : > { %s3138_s12 = sld [smem:[#allocation12_spill]]  ;;  %s3141_s28 = smov %s3132_s15 }
 0x459   : > { %s3139_s13 = sld [smem:[#allocation13_spill]] }
 0x45a   :  { %1727 = vsyncpa [#allocation5], 1 }
 0x45b   :  { %1729 = vsyncpa [#allocation5 + $0x1], 1 }

</bundles_post_ra>
